<compile_context>
chip_gen: v7x
topology: tpu7x:2x2x1
jax: 0.10.0
libtpu: 0.0.40
codegen_flags: <defaults>
</compile_context>

<pallas_src>
import functools

import jax
import jax.numpy as jnp
import numpy as np
from jax.experimental import pallas as pl
from jax.experimental.pallas import tpu as pltpu

DIM = 64  # hidden width, matches the PyTorch module


def _round8(n):
    return -(-n // 8) * 8


def _pick_tile(batch):
    """Batch tile TB: big tiles amortize the ~0.35us per-grid-step overhead, but at
    non-toy batch sizes keep >=2 grid steps so the ("parallel",) axis can shard
    across v7x's two TensorCores."""
    if batch < 16 or batch % 8 != 0:
        return batch                      # single tile; too small to split
    tb = min(256, batch // 2)             # cap; guarantees >= 2 tiles
    tb -= tb % 8
    while batch % tb:
        tb -= 8
    return tb


# --------------------------------------------------------------------------
# Fused kernel:
#   q(y|x)  : Linear -> LeakyReLU(0.2) -> Linear -> LeakyReLU(0.2) -> logits
#             -> softmax prob, gumbel-softmax sample
#   q(z|x,y): (split) Linear -> ReLU -> Linear -> ReLU -> fused [mu | softplus var]
# --------------------------------------------------------------------------
def _inference_kernel(temp_ref, x_ref, u_ref, w_ref, b_ref, yxs_ref, mv_ref, *,
                      dims, offs, hard, time_dependent):
    f32 = jnp.float32
    F, L, C, T = dims["in_dim"], dims["latent"], dims["cate"], dims["T"]
    D = DIM

    def w(name, rows, cols):              # static view into the packed weight slab
        o = offs[name]
        return w_ref[o:o + rows, :cols]

    def b(row, cols):                     # static view into the packed bias slab
        return b_ref[row:row + 1, :cols]

    x = x_ref[...]                        # (TB, T*F) — the only activation stream

    # ---------------- q(y|x) ----------------
    h = jnp.dot(x, w("w1_y", T * F, D), preferred_element_type=f32) + b(0, D)
    h = jnp.where(h > 0, h, 0.2 * h)                                  # LeakyReLU(0.2)
    h = jnp.dot(h, w("w2_y", D, D), preferred_element_type=f32) + b(1, D)
    h = jnp.where(h > 0, h, 0.2 * h)
    logits = jnp.dot(h, w("wl", D, C), preferred_element_type=f32) + b(2, C)

    # softmax probabilities (exact divide — rows must sum to 1 downstream)
    m = jnp.max(logits, axis=-1, keepdims=True)
    e = jnp.exp(logits - m)
    prob = e / jnp.sum(e, axis=-1, keepdims=True)

    # gumbel-softmax sample: softmax((logits + g) / temperature)
    eps = 1e-20
    g = -jnp.log(-jnp.log(u_ref[...] + eps) + eps)
    ys = (logits + g) * (1.0 / temp_ref[0])
    m2 = jnp.max(ys, axis=-1, keepdims=True)
    e2 = jnp.exp(ys - m2)
    y = e2 / jnp.sum(e2, axis=-1, keepdims=True)

    if hard:
        # straight-through forward value only (one-hot at first argmax);
        # no gradient path — inference use only.
        col = jax.lax.broadcasted_iota(jnp.int32, y.shape, 1)
        is_max = y >= jnp.max(y, axis=-1, keepdims=True)
        first = jnp.min(jnp.where(is_max, col, C), axis=-1, keepdims=True)
        y = (col == first).astype(f32)

    # one lane-packed store: [logits | prob | sample] -> (TB, 3*C)
    yxs_ref[...] = jnp.concatenate([logits, prob, y], axis=-1)

    # ---------------- q(z|x,y) ----------------
    w1zx = w("w1_z_x", F, D)
    w1zy = w("w1_z_y", C, D)
    w2z = w("w2_z", D, F)
    wmv = w("wmv", F, 2 * L)
    b2z = b(4, F)
    bmv = b(5, 2 * L)

    # categorical/bias part of the concat([x, y]) first layer — shared by all t
    y_term = jnp.dot(y, w1zy, preferred_element_type=f32) + b(3, D)   # (TB, D)

    def gaussian_head(xt):                                            # xt: (TB, F)
        h1 = jnp.maximum(jnp.dot(xt, w1zx, preferred_element_type=f32) + y_term, 0.0)
        h2 = jnp.maximum(jnp.dot(h1, w2z, preferred_element_type=f32) + b2z, 0.0)
        v = jnp.dot(h2, wmv, preferred_element_type=f32) + bmv        # (TB, 2L)=[mu|var]
        sp = jnp.maximum(v, 0.0) + jnp.log1p(jnp.exp(-jnp.abs(v)))    # stable softplus
        cc = jax.lax.broadcasted_iota(jnp.int32, v.shape, 1)
        return jnp.where(cc < L, v, sp)

    if time_dependent:
        # statically unrolled over T: every matmul stays 2-D (no mixing-matrix
        # matmul, no in-kernel reshape) and the result is written as one
        # lane-dense (TB, T*2L) slab.
        segs = [gaussian_head(x[:, t * F:(t + 1) * F]) for t in range(T)]
        mv_ref[...] = jnp.concatenate(segs, axis=-1)
    else:
        x_mean = sum(x[:, t * F:(t + 1) * F] for t in range(T)) * (1.0 / T)
        mv_ref[...] = gaussian_head(x_mean)


# --------------------------------------------------------------------------
# Parameter init (deterministic, torch-Linear-style uniform)
# --------------------------------------------------------------------------
def _linear_init(key, fan_in, fan_out):
    k1, k2 = jax.random.split(key)
    bound = 1.0 / float(fan_in) ** 0.5
    wgt = jax.random.uniform(k1, (fan_in, fan_out), jnp.float32, -bound, bound)
    bias = jax.random.uniform(k2, (1, fan_out), jnp.float32, -bound, bound)
    return wgt, bias


def init_params(key, in_dim, latent_dim, cate_dim, time_step):
    ks = jax.random.split(key, 7)
    p = {}
    # inference_qyx
    p["w1_y"], p["b1_y"] = _linear_init(ks[0], in_dim * time_step, DIM)
    p["w2_y"], p["b2_y"] = _linear_init(ks[1], DIM, DIM)
    p["wl"], p["bl"] = _linear_init(ks[2], DIM, cate_dim)
    # inference_qzyx: first layer stored split (x-part, y-part) to avoid a concat
    w1_z, p["b1_z"] = _linear_init(ks[3], in_dim + cate_dim, DIM)
    p["w1_z_x"], p["w1_z_y"] = w1_z[:in_dim], w1_z[in_dim:]
    p["w2_z"], p["b2_z"] = _linear_init(ks[4], DIM, in_dim)
    # Gaussian heads fused along fan_out: [mu | var]
    wmu, bmu = _linear_init(ks[5], in_dim, latent_dim)
    wvar, bvar = _linear_init(ks[6], in_dim, latent_dim)
    p["wmv"] = jnp.concatenate([wmu, wvar], axis=1)
    p["bmv"] = jnp.concatenate([bmu, bvar], axis=1)
    return p


def pack_params(params, in_dim, latent_dim, cate_dim, time_step):
    """Pack the 7 weights into one resident VMEM slab and the 6 biases into one
    (8, width) slab; the kernel slices them with static views (1-2 DMAs total)."""
    width = max(DIM, 2 * latent_dim, in_dim, cate_dim)

    order = ["w1_y", "w2_y", "wl", "w1_z_x", "w1_z_y", "w2_z", "wmv"]
    blocks, offs, off = [], {}, 0
    for name in order:
        a = params[name]
        rows = _round8(a.shape[0])
        blk = jnp.zeros((rows, width), jnp.float32).at[:a.shape[0], :a.shape[1]].set(a)
        offs[name] = off
        blocks.append(blk)
        off += rows
    wslab = jnp.concatenate(blocks, axis=0)

    bslab = jnp.zeros((8, width), jnp.float32)
    for i, name in enumerate(["b1_y", "b2_y", "bl", "b1_z", "b2_z", "bmv"]):
        bias = params[name]
        bslab = bslab.at[i, :bias.shape[1]].set(bias[0])

    return {"wslab": wslab, "bslab": bslab, "offsets": offs,
            "dims": {"in_dim": in_dim, "latent": latent_dim,
                     "cate": cate_dim, "T": time_step}}


# --------------------------------------------------------------------------
# Full InferenceNet forward (single fused pallas_call)
# --------------------------------------------------------------------------
def inference_net_forward(packed, inputs, u_gumbel, temperature=1.0, hard=0,
                          time_dependent_s=True):
    dims = packed["dims"]
    F, L, C, T = dims["in_dim"], dims["latent"], dims["cate"], dims["T"]
    B = inputs.shape[0]
    assert inputs.shape[1] == T and inputs.shape[2] == F

    x_flat = inputs.reshape(B, T * F)             # the only activation stream
    TB = _pick_tile(B)
    ntiles = B // TB
    mv_width = T * 2 * L if time_dependent_s else 2 * L

    temp = jnp.full((1,), temperature, dtype=jnp.float32)

    kernel = functools.partial(_inference_kernel, dims=dims, offs=packed["offsets"],
                               hard=bool(hard), time_dependent=bool(time_dependent_s))

    yxs, mv = pl.pallas_call(
        kernel,
        grid=(ntiles,),
        in_specs=[
            pl.BlockSpec(memory_space=pltpu.MemorySpace.SMEM),       # temperature scalar
            pl.BlockSpec((TB, T * F), lambda i: (i, 0)),             # x_flat (tiled)
            pl.BlockSpec((TB, C), lambda i: (i, 0)),                 # gumbel uniforms
            pl.BlockSpec(packed["wslab"].shape, lambda i: (0, 0)),   # weight slab (resident)
            pl.BlockSpec(packed["bslab"].shape, lambda i: (0, 0)),   # bias slab (resident)
        ],
        out_specs=(
            pl.BlockSpec((TB, 3 * C), lambda i: (i, 0)),             # [logits|prob|sample]
            pl.BlockSpec((TB, mv_width), lambda i: (i, 0)),          # [mu|var] per step
        ),
        out_shape=(
            jax.ShapeDtypeStruct((B, 3 * C), jnp.float32),
            jax.ShapeDtypeStruct((B, mv_width), jnp.float32),
        ),
        compiler_params=pltpu.CompilerParams(
            dimension_semantics=("parallel",),
            vmem_limit_bytes=48 * 1024 * 1024),
    )(temp, x_flat, u_gumbel, packed["wslab"], packed["bslab"])

    w_logits = yxs[:, :C]
    w_prob = yxs[:, C:2 * C]
    w_sample = yxs[:, 2 * C:3 * C]
    if time_dependent_s:
        mv3 = mv.reshape(B, T, 2 * L)
        mu, var = mv3[..., :L], mv3[..., L:]
    else:
        mu, var = mv[:, :L], mv[:, L:]

    # TODO(synk): the reparameterized Gaussian sample z is computed then discarded by
    # the PyTorch InferenceNet.forward, so it is intentionally not materialized here.
    out = {
        "s_mu_infer": mu,
        "s_var_infer": var,
        "logits": w_logits,
        "prob_cat": w_prob,
        "categorical": w_sample,
    }
    return {k: v[:, None] for k, v in out.items()}   # unsqueeze(1)


# --------------------------------------------------------------------------
# Pure-JAX reference (mirrors the PyTorch forward) for the correctness check
# --------------------------------------------------------------------------
def reference_forward(p, inputs, u_gumbel, temperature=1.0, hard=0, time_dependent_s=True):
    B, T, in_dim = inputs.shape
    latent_dim = p["wmv"].shape[1] // 2
    x = inputs.reshape(B, -1)
    h = x @ p["w1_y"] + p["b1_y"]
    h = jnp.where(h > 0, h, 0.2 * h)
    h = h @ p["w2_y"] + p["b2_y"]
    h = jnp.where(h > 0, h, 0.2 * h)
    logits = h @ p["wl"] + p["bl"]
    prob = jax.nn.softmax(logits, axis=-1)
    g = -jnp.log(-jnp.log(u_gumbel + 1e-20) + 1e-20)
    y = jax.nn.softmax((logits + g) / temperature, axis=-1)
    if hard:
        y = jax.nn.one_hot(jnp.argmax(y, axis=-1), y.shape[-1], dtype=y.dtype)
    w1z = jnp.concatenate([p["w1_z_x"], p["w1_z_y"]], axis=0)
    if time_dependent_s:
        y_mc = jnp.broadcast_to(y[:, None, :], (B, T, y.shape[-1]))
        cc = jnp.concatenate([inputs, y_mc], axis=-1).reshape(B * T, -1)
    else:
        cc = jnp.concatenate([inputs.mean(axis=1), y], axis=-1)
    hz = jnp.maximum(cc @ w1z + p["b1_z"], 0.0)
    hz = jnp.maximum(hz @ p["w2_z"] + p["b2_z"], 0.0)
    v = hz @ p["wmv"] + p["bmv"]
    mu, var = v[:, :latent_dim], jax.nn.softplus(v[:, latent_dim:])
    if time_dependent_s:
        mu = mu.reshape(B, T, latent_dim)
        var = var.reshape(B, T, latent_dim)
    return logits, prob, y, mu, var


if __name__ == "__main__":
    B, T, in_dim, latent_dim, cate_dim = 2, 8, 16, 8, 4

    key = jax.random.PRNGKey(0)
    kp, kx, ku = jax.random.split(key, 3)

    params = init_params(kp, in_dim, latent_dim, cate_dim, T)
    packed = pack_params(params, in_dim, latent_dim, cate_dim, T)   # one-time packing
    inputs = jax.random.normal(kx, (B, T, in_dim), jnp.float32)
    # uniform noise feeding the in-kernel Gumbel transform
    u_gumbel = jax.random.uniform(ku, (B, cate_dim), jnp.float32,
                                  minval=1e-6, maxval=1.0 - 1e-6)

    # ---- time-dependent path (module default) ----
    out = inference_net_forward(packed, inputs, u_gumbel,
                                temperature=1.0, hard=0, time_dependent_s=True)
    jax.block_until_ready(out)

    assert out["s_mu_infer"].shape == (B, 1, T, latent_dim)
    assert out["s_var_infer"].shape == (B, 1, T, latent_dim)
    assert out["logits"].shape == (B, 1, cate_dim)
    assert out["prob_cat"].shape == (B, 1, cate_dim)
    assert out["categorical"].shape == (B, 1, cate_dim)

    r_logits, r_prob, r_y, r_mu, r_var = reference_forward(
        params, inputs, u_gumbel, 1.0, 0, True)
    np.testing.assert_allclose(np.asarray(out["logits"][:, 0]), np.asarray(r_logits),
                               rtol=2e-2, atol=1e-3)
    np.testing.assert_allclose(np.asarray(out["prob_cat"][:, 0]), np.asarray(r_prob),
                               rtol=2e-2, atol=1e-3)
    np.testing.assert_allclose(np.asarray(out["categorical"][:, 0]), np.asarray(r_y),
                               rtol=2e-2, atol=1e-3)
    np.testing.assert_allclose(np.asarray(out["s_mu_infer"][:, 0]), np.asarray(r_mu),
                               rtol=2e-2, atol=1e-3)
    np.testing.assert_allclose(np.asarray(out["s_var_infer"][:, 0]), np.asarray(r_var),
                               rtol=2e-2, atol=1e-3)

    # ---- time-independent path ----
    out2 = inference_net_forward(packed, inputs, u_gumbel,
                                 temperature=0.7, hard=0, time_dependent_s=False)
    jax.block_until_ready(out2)
    assert out2["s_mu_infer"].shape == (B, 1, latent_dim)
    assert out2["s_var_infer"].shape == (B, 1, latent_dim)
    _, _, _, r_mu2, r_var2 = reference_forward(params, inputs, u_gumbel, 0.7, 0, False)
    np.testing.assert_allclose(np.asarray(out2["s_mu_infer"][:, 0]), np.asarray(r_mu2),
                               rtol=2e-2, atol=1e-3)
    np.testing.assert_allclose(np.asarray(out2["s_var_infer"][:, 0]), np.asarray(r_var2),
                               rtol=2e-2, atol=1e-3)

    print("KERNEL_OK")
</pallas_src>

<mosaic_0001>
module attributes {stable_mosaic.version = 11 : i64} {
  func.func @_inference_kernel(%arg0: i32, %arg1: memref<1xf32, #tpu.memory_space<smem>>, %arg2: memref<2x128xf32, #tpu.memory_space<vmem>>, %arg3: memref<2x4xf32, #tpu.memory_space<vmem>>, %arg4: memref<360x64xf32, #tpu.memory_space<vmem>>, %arg5: memref<8x64xf32, #tpu.memory_space<vmem>>, %arg6: memref<2x12xf32, #tpu.memory_space<vmem>>, %arg7: memref<2x128xf32, #tpu.memory_space<vmem>>) attributes {dimension_semantics = [#tpu.dimension_semantics<parallel>], iteration_bounds = array<i64: 1>, scalar_prefetch = 0 : i64, scratch_operands = 0 : i64, tpu.core_type = #tpu.core_type<tc>, window_params = [{transform_indices = @transform_0, window_bounds = array<i64: 1>}, {transform_indices = @transform_1, window_bounds = array<i64: 2, 128>}, {transform_indices = @transform_2, window_bounds = array<i64: 2, 4>}, {pipeline_mode = #tpu.pipeline_mode<synchronous>, transform_indices = @transform_3, window_bounds = array<i64: 360, 64>}, {pipeline_mode = #tpu.pipeline_mode<synchronous>, transform_indices = @transform_4, window_bounds = array<i64: 8, 64>}, {transform_indices = @transform_5, window_bounds = array<i64: 2, 12>}, {transform_indices = @transform_6, window_bounds = array<i64: 2, 128>}]} {
    %c0 = arith.constant 0 : index
    %c0_0 = arith.constant 0 : index
    %0 = vector.load %arg2[%c0, %c0_0] : memref<2x128xf32, #tpu.memory_space<vmem>>, vector<2x128xf32>
    %c0_1 = arith.constant 0 : index
    %c0_2 = arith.constant 0 : index
    %1 = vector.load %arg4[%c0_1, %c0_2] : memref<360x64xf32, #tpu.memory_space<vmem>>, vector<128x64xf32>
    %cst = arith.constant dense<0.000000e+00> : vector<2x64xf32>
    %2 = tpu.matmul %0, %1, %cst {dimension_numbers = #tpu.dot_dimension_numbers<[1], [0], [0], [1], [0, 0, 1, 1], [], []>} : vector<2x128xf32>, vector<128x64xf32>, vector<2x64xf32> -> vector<2x64xf32>
    %c0_3 = arith.constant 0 : index
    %c0_4 = arith.constant 0 : index
    %3 = vector.load %arg5[%c0_3, %c0_4] : memref<8x64xf32, #tpu.memory_space<vmem>>, vector<1x64xf32>
    %4 = vector.broadcast %3 : vector<1x64xf32> to vector<2x64xf32>
    %5 = arith.addf %2, %4 : vector<2x64xf32>
    %cst_5 = arith.constant 0.000000e+00 : f32
    %6 = vector.broadcast %cst_5 : f32 to vector<2x64xf32>
    %7 = arith.cmpf ogt, %5, %6 : vector<2x64xf32>
    %cst_6 = arith.constant 2.000000e-01 : f32
    %8 = vector.broadcast %cst_6 : f32 to vector<2x64xf32>
    %9 = arith.mulf %8, %5 : vector<2x64xf32>
    %10 = arith.select %7, %5, %9 : vector<2x64xi1>, vector<2x64xf32>
    %c128 = arith.constant 128 : index
    %c0_7 = arith.constant 0 : index
    %11 = vector.load %arg4[%c128, %c0_7] : memref<360x64xf32, #tpu.memory_space<vmem>>, vector<64x64xf32>
    %cst_8 = arith.constant dense<0.000000e+00> : vector<2x64xf32>
    %12 = tpu.matmul %10, %11, %cst_8 {dimension_numbers = #tpu.dot_dimension_numbers<[1], [0], [0], [1], [0, 0, 1, 1], [], []>} : vector<2x64xf32>, vector<64x64xf32>, vector<2x64xf32> -> vector<2x64xf32>
    %c1 = arith.constant 1 : index
    %c0_9 = arith.constant 0 : index
    %13 = vector.load %arg5[%c1, %c0_9] : memref<8x64xf32, #tpu.memory_space<vmem>>, vector<1x64xf32>
    %14 = vector.broadcast %13 : vector<1x64xf32> to vector<2x64xf32>
    %15 = arith.addf %12, %14 : vector<2x64xf32>
    %cst_10 = arith.constant 0.000000e+00 : f32
    %16 = vector.broadcast %cst_10 : f32 to vector<2x64xf32>
    %17 = arith.cmpf ogt, %15, %16 : vector<2x64xf32>
    %cst_11 = arith.constant 2.000000e-01 : f32
    %18 = vector.broadcast %cst_11 : f32 to vector<2x64xf32>
    %19 = arith.mulf %18, %15 : vector<2x64xf32>
    %20 = arith.select %17, %15, %19 : vector<2x64xi1>, vector<2x64xf32>
    %c192 = arith.constant 192 : index
    %c0_12 = arith.constant 0 : index
    %21 = vector.load %arg4[%c192, %c0_12] : memref<360x64xf32, #tpu.memory_space<vmem>>, vector<64x4xf32>
    %cst_13 = arith.constant dense<0.000000e+00> : vector<2x4xf32>
    %22 = tpu.matmul %20, %21, %cst_13 {dimension_numbers = #tpu.dot_dimension_numbers<[1], [0], [0], [1], [0, 0, 1, 1], [], []>} : vector<2x64xf32>, vector<64x4xf32>, vector<2x4xf32> -> vector<2x4xf32>
    %c2 = arith.constant 2 : index
    %c0_14 = arith.constant 0 : index
    %23 = vector.load %arg5[%c2, %c0_14] : memref<8x64xf32, #tpu.memory_space<vmem>>, vector<1x4xf32>
    %24 = vector.broadcast %23 : vector<1x4xf32> to vector<2x4xf32>
    %25 = arith.addf %22, %24 : vector<2x4xf32>
    %cst_15 = arith.constant dense<0xFF800000> : vector<2xf32>
    %26 = vector.multi_reduction <maximumf>, %25, %cst_15 [1] : vector<2x4xf32> to vector<2xf32>
    %27 = vector.shape_cast %26 : vector<2xf32> to vector<2x1xf32>
    %28 = vector.broadcast %27 : vector<2x1xf32> to vector<2x4xf32>
    %29 = arith.subf %25, %28 : vector<2x4xf32>
    %30 = math.exp %29 : vector<2x4xf32>
    %cst_16 = arith.constant dense<0.000000e+00> : vector<2xf32>
    %31 = vector.multi_reduction <add>, %30, %cst_16 [1] : vector<2x4xf32> to vector<2xf32>
    %32 = vector.shape_cast %31 : vector<2xf32> to vector<2x1xf32>
    %33 = vector.broadcast %32 : vector<2x1xf32> to vector<2x4xf32>
    %34 = arith.divf %30, %33 : vector<2x4xf32>
    %c0_17 = arith.constant 0 : index
    %c0_18 = arith.constant 0 : index
    %35 = vector.load %arg3[%c0_17, %c0_18] : memref<2x4xf32, #tpu.memory_space<vmem>>, vector<2x4xf32>
    %cst_19 = arith.constant 9.99999968E-21 : f32
    %36 = vector.broadcast %cst_19 : f32 to vector<2x4xf32>
    %37 = arith.addf %35, %36 : vector<2x4xf32>
    %38 = math.log %37 : vector<2x4xf32>
    %cst_20 = arith.constant 0.000000e+00 : f32
    %39 = vector.broadcast %cst_20 : f32 to vector<2x4xf32>
    %40 = arith.subf %39, %38 : vector<2x4xf32>
    %cst_21 = arith.constant 9.99999968E-21 : f32
    %41 = vector.broadcast %cst_21 : f32 to vector<2x4xf32>
    %42 = arith.addf %40, %41 : vector<2x4xf32>
    %43 = math.log %42 : vector<2x4xf32>
    %cst_22 = arith.constant 0.000000e+00 : f32
    %44 = vector.broadcast %cst_22 : f32 to vector<2x4xf32>
    %45 = arith.subf %44, %43 : vector<2x4xf32>
    %46 = arith.addf %25, %45 : vector<2x4xf32>
    %c0_23 = arith.constant 0 : index
    %47 = memref.load %arg1[%c0_23] : memref<1xf32, #tpu.memory_space<smem>>
    %cst_24 = arith.constant 1.000000e+00 : f32
    %48 = arith.divf %cst_24, %47 : f32
    %49 = vector.broadcast %48 : f32 to vector<2x4xf32>
    %50 = arith.mulf %46, %49 : vector<2x4xf32>
    %cst_25 = arith.constant dense<0xFF800000> : vector<2xf32>
    %51 = vector.multi_reduction <maximumf>, %50, %cst_25 [1] : vector<2x4xf32> to vector<2xf32>
    %52 = vector.shape_cast %51 : vector<2xf32> to vector<2x1xf32>
    %53 = vector.broadcast %52 : vector<2x1xf32> to vector<2x4xf32>
    %54 = arith.subf %50, %53 : vector<2x4xf32>
    %55 = math.exp %54 : vector<2x4xf32>
    %cst_26 = arith.constant dense<0.000000e+00> : vector<2xf32>
    %56 = vector.multi_reduction <add>, %55, %cst_26 [1] : vector<2x4xf32> to vector<2xf32>
    %57 = vector.shape_cast %56 : vector<2xf32> to vector<2x1xf32>
    %58 = vector.broadcast %57 : vector<2x1xf32> to vector<2x4xf32>
    %59 = arith.divf %55, %58 : vector<2x4xf32>
    %60 = tpu.concatenate %25, %34, %59 in 1 : vector<2x4xf32>, vector<2x4xf32>, vector<2x4xf32> -> vector<2x12xf32>
    %c0_27 = arith.constant 0 : index
    %c0_28 = arith.constant 0 : index
    %61 = vector.load %arg6[%c0_27, %c0_28] : memref<2x12xf32, #tpu.memory_space<vmem>>, vector<2x12xf32>
    tpu.vector_store %arg6[%c0_27, %c0_28], %60 {strides = array<i32>} : memref<2x12xf32, #tpu.memory_space<vmem>>, vector<2x12xf32>,
    %c256 = arith.constant 256 : index
    %c0_29 = arith.constant 0 : index
    %62 = vector.load %arg4[%c256, %c0_29] : memref<360x64xf32, #tpu.memory_space<vmem>>, vector<16x64xf32>
    %c272 = arith.constant 272 : index
    %c0_30 = arith.constant 0 : index
    %63 = vector.load %arg4[%c272, %c0_30] : memref<360x64xf32, #tpu.memory_space<vmem>>, vector<4x64xf32>
    %c280 = arith.constant 280 : index
    %c0_31 = arith.constant 0 : index
    %64 = vector.load %arg4[%c280, %c0_31] : memref<360x64xf32, #tpu.memory_space<vmem>>, vector<64x16xf32>
    %c344 = arith.constant 344 : index
    %c0_32 = arith.constant 0 : index
    %65 = vector.load %arg4[%c344, %c0_32] : memref<360x64xf32, #tpu.memory_space<vmem>>, vector<16x16xf32>
    %c4 = arith.constant 4 : index
    %c0_33 = arith.constant 0 : index
    %66 = vector.load %arg5[%c4, %c0_33] : memref<8x64xf32, #tpu.memory_space<vmem>>, vector<1x16xf32>
    %c5 = arith.constant 5 : index
    %c0_34 = arith.constant 0 : index
    %67 = vector.load %arg5[%c5, %c0_34] : memref<8x64xf32, #tpu.memory_space<vmem>>, vector<1x16xf32>
    %cst_35 = arith.constant dense<0.000000e+00> : vector<2x64xf32>
    %68 = tpu.matmul %59, %63, %cst_35 {dimension_numbers = #tpu.dot_dimension_numbers<[1], [0], [0], [1], [0, 0, 1, 1], [], []>} : vector<2x4xf32>, vector<4x64xf32>, vector<2x64xf32> -> vector<2x64xf32>
    %c3 = arith.constant 3 : index
    %c0_36 = arith.constant 0 : index
    %69 = vector.load %arg5[%c3, %c0_36] : memref<8x64xf32, #tpu.memory_space<vmem>>, vector<1x64xf32>
    %70 = vector.broadcast %69 : vector<1x64xf32> to vector<2x64xf32>
    %71 = arith.addf %68, %70 : vector<2x64xf32>
    %72 = vector.extract_strided_slice %0 {offsets = [0, 0], sizes = [2, 16], strides = [1, 1]} : vector<2x128xf32> to vector<2x16xf32>
    %cst_37 = arith.constant dense<0.000000e+00> : vector<2x64xf32>
    %73 = tpu.matmul %72, %62, %cst_37 {dimension_numbers = #tpu.dot_dimension_numbers<[1], [0], [0], [1], [0, 0, 1, 1], [], []>} : vector<2x16xf32>, vector<16x64xf32>, vector<2x64xf32> -> vector<2x64xf32>
    %74 = arith.addf %73, %71 : vector<2x64xf32>
    %cst_38 = arith.constant 0.000000e+00 : f32
    %75 = vector.broadcast %cst_38 : f32 to vector<2x64xf32>
    %76 = arith.maximumf %74, %75 : vector<2x64xf32>
    %cst_39 = arith.constant dense<0.000000e+00> : vector<2x16xf32>
    %77 = tpu.matmul %76, %64, %cst_39 {dimension_numbers = #tpu.dot_dimension_numbers<[1], [0], [0], [1], [0, 0, 1, 1], [], []>} : vector<2x64xf32>, vector<64x16xf32>, vector<2x16xf32> -> vector<2x16xf32>
    %78 = vector.broadcast %66 : vector<1x16xf32> to vector<2x16xf32>
    %79 = arith.addf %77, %78 : vector<2x16xf32>
    %cst_40 = arith.constant 0.000000e+00 : f32
    %80 = vector.broadcast %cst_40 : f32 to vector<2x16xf32>
    %81 = arith.maximumf %79, %80 : vector<2x16xf32>
    %cst_41 = arith.constant dense<0.000000e+00> : vector<2x16xf32>
    %82 = tpu.matmul %81, %65, %cst_41 {dimension_numbers = #tpu.dot_dimension_numbers<[1], [0], [0], [1], [0, 0, 1, 1], [], []>} : vector<2x16xf32>, vector<16x16xf32>, vector<2x16xf32> -> vector<2x16xf32>
    %83 = vector.broadcast %67 : vector<1x16xf32> to vector<2x16xf32>
    %84 = arith.addf %82, %83 : vector<2x16xf32>
    %cst_42 = arith.constant 0.000000e+00 : f32
    %85 = vector.broadcast %cst_42 : f32 to vector<2x16xf32>
    %86 = arith.maximumf %84, %85 : vector<2x16xf32>
    %87 = math.absf %84 : vector<2x16xf32>
    %cst_43 = arith.constant 0.000000e+00 : f32
    %88 = vector.broadcast %cst_43 : f32 to vector<2x16xf32>
    %89 = arith.subf %88, %87 : vector<2x16xf32>
    %90 = math.exp %89 : vector<2x16xf32>
    %91 = math.log1p %90 : vector<2x16xf32>
    %92 = arith.addf %86, %91 : vector<2x16xf32>
    %93 = tpu.iota {dimensions = array<i32: 1>} : vector<2x16xi32>
    %c8_i32 = arith.constant 8 : i32
    %94 = vector.broadcast %c8_i32 : i32 to vector<2x16xi32>
    %95 = arith.cmpi slt, %93, %94 : vector<2x16xi32>
    %96 = arith.select %95, %84, %92 : vector<2x16xi1>, vector<2x16xf32>
    %97 = vector.extract_strided_slice %0 {offsets = [0, 16], sizes = [2, 16], strides = [1, 1]} : vector<2x128xf32> to vector<2x16xf32>
    %cst_44 = arith.constant dense<0.000000e+00> : vector<2x64xf32>
    %98 = tpu.matmul %97, %62, %cst_44 {dimension_numbers = #tpu.dot_dimension_numbers<[1], [0], [0], [1], [0, 0, 1, 1], [], []>} : vector<2x16xf32>, vector<16x64xf32>, vector<2x64xf32> -> vector<2x64xf32>
    %99 = arith.addf %98, %71 : vector<2x64xf32>
    %cst_45 = arith.constant 0.000000e+00 : f32
    %100 = vector.broadcast %cst_45 : f32 to vector<2x64xf32>
    %101 = arith.maximumf %99, %100 : vector<2x64xf32>
    %cst_46 = arith.constant dense<0.000000e+00> : vector<2x16xf32>
    %102 = tpu.matmul %101, %64, %cst_46 {dimension_numbers = #tpu.dot_dimension_numbers<[1], [0], [0], [1], [0, 0, 1, 1], [], []>} : vector<2x64xf32>, vector<64x16xf32>, vector<2x16xf32> -> vector<2x16xf32>
    %103 = vector.broadcast %66 : vector<1x16xf32> to vector<2x16xf32>
    %104 = arith.addf %102, %103 : vector<2x16xf32>
    %cst_47 = arith.constant 0.000000e+00 : f32
    %105 = vector.broadcast %cst_47 : f32 to vector<2x16xf32>
    %106 = arith.maximumf %104, %105 : vector<2x16xf32>
    %cst_48 = arith.constant dense<0.000000e+00> : vector<2x16xf32>
    %107 = tpu.matmul %106, %65, %cst_48 {dimension_numbers = #tpu.dot_dimension_numbers<[1], [0], [0], [1], [0, 0, 1, 1], [], []>} : vector<2x16xf32>, vector<16x16xf32>, vector<2x16xf32> -> vector<2x16xf32>
    %108 = vector.broadcast %67 : vector<1x16xf32> to vector<2x16xf32>
    %109 = arith.addf %107, %108 : vector<2x16xf32>
    %cst_49 = arith.constant 0.000000e+00 : f32
    %110 = vector.broadcast %cst_49 : f32 to vector<2x16xf32>
    %111 = arith.maximumf %109, %110 : vector<2x16xf32>
    %112 = math.absf %109 : vector<2x16xf32>
    %cst_50 = arith.constant 0.000000e+00 : f32
    %113 = vector.broadcast %cst_50 : f32 to vector<2x16xf32>
    %114 = arith.subf %113, %112 : vector<2x16xf32>
    %115 = math.exp %114 : vector<2x16xf32>
    %116 = math.log1p %115 : vector<2x16xf32>
    %117 = arith.addf %111, %116 : vector<2x16xf32>
    %118 = tpu.iota {dimensions = array<i32: 1>} : vector<2x16xi32>
    %c8_i32_51 = arith.constant 8 : i32
    %119 = vector.broadcast %c8_i32_51 : i32 to vector<2x16xi32>
    %120 = arith.cmpi slt, %118, %119 : vector<2x16xi32>
    %121 = arith.select %120, %109, %117 : vector<2x16xi1>, vector<2x16xf32>
    %122 = vector.extract_strided_slice %0 {offsets = [0, 32], sizes = [2, 16], strides = [1, 1]} : vector<2x128xf32> to vector<2x16xf32>
    %cst_52 = arith.constant dense<0.000000e+00> : vector<2x64xf32>
    %123 = tpu.matmul %122, %62, %cst_52 {dimension_numbers = #tpu.dot_dimension_numbers<[1], [0], [0], [1], [0, 0, 1, 1], [], []>} : vector<2x16xf32>, vector<16x64xf32>, vector<2x64xf32> -> vector<2x64xf32>
    %124 = arith.addf %123, %71 : vector<2x64xf32>
    %cst_53 = arith.constant 0.000000e+00 : f32
    %125 = vector.broadcast %cst_53 : f32 to vector<2x64xf32>
    %126 = arith.maximumf %124, %125 : vector<2x64xf32>
    %cst_54 = arith.constant dense<0.000000e+00> : vector<2x16xf32>
    %127 = tpu.matmul %126, %64, %cst_54 {dimension_numbers = #tpu.dot_dimension_numbers<[1], [0], [0], [1], [0, 0, 1, 1], [], []>} : vector<2x64xf32>, vector<64x16xf32>, vector<2x16xf32> -> vector<2x16xf32>
    %128 = vector.broadcast %66 : vector<1x16xf32> to vector<2x16xf32>
    %129 = arith.addf %127, %128 : vector<2x16xf32>
    %cst_55 = arith.constant 0.000000e+00 : f32
    %130 = vector.broadcast %cst_55 : f32 to vector<2x16xf32>
    %131 = arith.maximumf %129, %130 : vector<2x16xf32>
    %cst_56 = arith.constant dense<0.000000e+00> : vector<2x16xf32>
    %132 = tpu.matmul %131, %65, %cst_56 {dimension_numbers = #tpu.dot_dimension_numbers<[1], [0], [0], [1], [0, 0, 1, 1], [], []>} : vector<2x16xf32>, vector<16x16xf32>, vector<2x16xf32> -> vector<2x16xf32>
    %133 = vector.broadcast %67 : vector<1x16xf32> to vector<2x16xf32>
    %134 = arith.addf %132, %133 : vector<2x16xf32>
    %cst_57 = arith.constant 0.000000e+00 : f32
    %135 = vector.broadcast %cst_57 : f32 to vector<2x16xf32>
    %136 = arith.maximumf %134, %135 : vector<2x16xf32>
    %137 = math.absf %134 : vector<2x16xf32>
    %cst_58 = arith.constant 0.000000e+00 : f32
    %138 = vector.broadcast %cst_58 : f32 to vector<2x16xf32>
    %139 = arith.subf %138, %137 : vector<2x16xf32>
    %140 = math.exp %139 : vector<2x16xf32>
    %141 = math.log1p %140 : vector<2x16xf32>
    %142 = arith.addf %136, %141 : vector<2x16xf32>
    %143 = tpu.iota {dimensions = array<i32: 1>} : vector<2x16xi32>
    %c8_i32_59 = arith.constant 8 : i32
    %144 = vector.broadcast %c8_i32_59 : i32 to vector<2x16xi32>
    %145 = arith.cmpi slt, %143, %144 : vector<2x16xi32>
    %146 = arith.select %145, %134, %142 : vector<2x16xi1>, vector<2x16xf32>
    %147 = vector.extract_strided_slice %0 {offsets = [0, 48], sizes = [2, 16], strides = [1, 1]} : vector<2x128xf32> to vector<2x16xf32>
    %cst_60 = arith.constant dense<0.000000e+00> : vector<2x64xf32>
    %148 = tpu.matmul %147, %62, %cst_60 {dimension_numbers = #tpu.dot_dimension_numbers<[1], [0], [0], [1], [0, 0, 1, 1], [], []>} : vector<2x16xf32>, vector<16x64xf32>, vector<2x64xf32> -> vector<2x64xf32>
    %149 = arith.addf %148, %71 : vector<2x64xf32>
    %cst_61 = arith.constant 0.000000e+00 : f32
    %150 = vector.broadcast %cst_61 : f32 to vector<2x64xf32>
    %151 = arith.maximumf %149, %150 : vector<2x64xf32>
    %cst_62 = arith.constant dense<0.000000e+00> : vector<2x16xf32>
    %152 = tpu.matmul %151, %64, %cst_62 {dimension_numbers = #tpu.dot_dimension_numbers<[1], [0], [0], [1], [0, 0, 1, 1], [], []>} : vector<2x64xf32>, vector<64x16xf32>, vector<2x16xf32> -> vector<2x16xf32>
    %153 = vector.broadcast %66 : vector<1x16xf32> to vector<2x16xf32>
    %154 = arith.addf %152, %153 : vector<2x16xf32>
    %cst_63 = arith.constant 0.000000e+00 : f32
    %155 = vector.broadcast %cst_63 : f32 to vector<2x16xf32>
    %156 = arith.maximumf %154, %155 : vector<2x16xf32>
    %cst_64 = arith.constant dense<0.000000e+00> : vector<2x16xf32>
    %157 = tpu.matmul %156, %65, %cst_64 {dimension_numbers = #tpu.dot_dimension_numbers<[1], [0], [0], [1], [0, 0, 1, 1], [], []>} : vector<2x16xf32>, vector<16x16xf32>, vector<2x16xf32> -> vector<2x16xf32>
    %158 = vector.broadcast %67 : vector<1x16xf32> to vector<2x16xf32>
    %159 = arith.addf %157, %158 : vector<2x16xf32>
    %cst_65 = arith.constant 0.000000e+00 : f32
    %160 = vector.broadcast %cst_65 : f32 to vector<2x16xf32>
    %161 = arith.maximumf %159, %160 : vector<2x16xf32>
    %162 = math.absf %159 : vector<2x16xf32>
    %cst_66 = arith.constant 0.000000e+00 : f32
    %163 = vector.broadcast %cst_66 : f32 to vector<2x16xf32>
    %164 = arith.subf %163, %162 : vector<2x16xf32>
    %165 = math.exp %164 : vector<2x16xf32>
    %166 = math.log1p %165 : vector<2x16xf32>
    %167 = arith.addf %161, %166 : vector<2x16xf32>
    %168 = tpu.iota {dimensions = array<i32: 1>} : vector<2x16xi32>
    %c8_i32_67 = arith.constant 8 : i32
    %169 = vector.broadcast %c8_i32_67 : i32 to vector<2x16xi32>
    %170 = arith.cmpi slt, %168, %169 : vector<2x16xi32>
    %171 = arith.select %170, %159, %167 : vector<2x16xi1>, vector<2x16xf32>
    %172 = vector.extract_strided_slice %0 {offsets = [0, 64], sizes = [2, 16], strides = [1, 1]} : vector<2x128xf32> to vector<2x16xf32>
    %cst_68 = arith.constant dense<0.000000e+00> : vector<2x64xf32>
    %173 = tpu.matmul %172, %62, %cst_68 {dimension_numbers = #tpu.dot_dimension_numbers<[1], [0], [0], [1], [0, 0, 1, 1], [], []>} : vector<2x16xf32>, vector<16x64xf32>, vector<2x64xf32> -> vector<2x64xf32>
    %174 = arith.addf %173, %71 : vector<2x64xf32>
    %cst_69 = arith.constant 0.000000e+00 : f32
    %175 = vector.broadcast %cst_69 : f32 to vector<2x64xf32>
    %176 = arith.maximumf %174, %175 : vector<2x64xf32>
    %cst_70 = arith.constant dense<0.000000e+00> : vector<2x16xf32>
    %177 = tpu.matmul %176, %64, %cst_70 {dimension_numbers = #tpu.dot_dimension_numbers<[1], [0], [0], [1], [0, 0, 1, 1], [], []>} : vector<2x64xf32>, vector<64x16xf32>, vector<2x16xf32> -> vector<2x16xf32>
    %178 = vector.broadcast %66 : vector<1x16xf32> to vector<2x16xf32>
    %179 = arith.addf %177, %178 : vector<2x16xf32>
    %cst_71 = arith.constant 0.000000e+00 : f32
    %180 = vector.broadcast %cst_71 : f32 to vector<2x16xf32>
    %181 = arith.maximumf %179, %180 : vector<2x16xf32>
    %cst_72 = arith.constant dense<0.000000e+00> : vector<2x16xf32>
    %182 = tpu.matmul %181, %65, %cst_72 {dimension_numbers = #tpu.dot_dimension_numbers<[1], [0], [0], [1], [0, 0, 1, 1], [], []>} : vector<2x16xf32>, vector<16x16xf32>, vector<2x16xf32> -> vector<2x16xf32>
    %183 = vector.broadcast %67 : vector<1x16xf32> to vector<2x16xf32>
    %184 = arith.addf %182, %183 : vector<2x16xf32>
    %cst_73 = arith.constant 0.000000e+00 : f32
    %185 = vector.broadcast %cst_73 : f32 to vector<2x16xf32>
    %186 = arith.maximumf %184, %185 : vector<2x16xf32>
    %187 = math.absf %184 : vector<2x16xf32>
    %cst_74 = arith.constant 0.000000e+00 : f32
    %188 = vector.broadcast %cst_74 : f32 to vector<2x16xf32>
    %189 = arith.subf %188, %187 : vector<2x16xf32>
    %190 = math.exp %189 : vector<2x16xf32>
    %191 = math.log1p %190 : vector<2x16xf32>
    %192 = arith.addf %186, %191 : vector<2x16xf32>
    %193 = tpu.iota {dimensions = array<i32: 1>} : vector<2x16xi32>
    %c8_i32_75 = arith.constant 8 : i32
    %194 = vector.broadcast %c8_i32_75 : i32 to vector<2x16xi32>
    %195 = arith.cmpi slt, %193, %194 : vector<2x16xi32>
    %196 = arith.select %195, %184, %192 : vector<2x16xi1>, vector<2x16xf32>
    %197 = vector.extract_strided_slice %0 {offsets = [0, 80], sizes = [2, 16], strides = [1, 1]} : vector<2x128xf32> to vector<2x16xf32>
    %cst_76 = arith.constant dense<0.000000e+00> : vector<2x64xf32>
    %198 = tpu.matmul %197, %62, %cst_76 {dimension_numbers = #tpu.dot_dimension_numbers<[1], [0], [0], [1], [0, 0, 1, 1], [], []>} : vector<2x16xf32>, vector<16x64xf32>, vector<2x64xf32> -> vector<2x64xf32>
    %199 = arith.addf %198, %71 : vector<2x64xf32>
    %cst_77 = arith.constant 0.000000e+00 : f32
    %200 = vector.broadcast %cst_77 : f32 to vector<2x64xf32>
    %201 = arith.maximumf %199, %200 : vector<2x64xf32>
    %cst_78 = arith.constant dense<0.000000e+00> : vector<2x16xf32>
    %202 = tpu.matmul %201, %64, %cst_78 {dimension_numbers = #tpu.dot_dimension_numbers<[1], [0], [0], [1], [0, 0, 1, 1], [], []>} : vector<2x64xf32>, vector<64x16xf32>, vector<2x16xf32> -> vector<2x16xf32>
    %203 = vector.broadcast %66 : vector<1x16xf32> to vector<2x16xf32>
    %204 = arith.addf %202, %203 : vector<2x16xf32>
    %cst_79 = arith.constant 0.000000e+00 : f32
    %205 = vector.broadcast %cst_79 : f32 to vector<2x16xf32>
    %206 = arith.maximumf %204, %205 : vector<2x16xf32>
    %cst_80 = arith.constant dense<0.000000e+00> : vector<2x16xf32>
    %207 = tpu.matmul %206, %65, %cst_80 {dimension_numbers = #tpu.dot_dimension_numbers<[1], [0], [0], [1], [0, 0, 1, 1], [], []>} : vector<2x16xf32>, vector<16x16xf32>, vector<2x16xf32> -> vector<2x16xf32>
    %208 = vector.broadcast %67 : vector<1x16xf32> to vector<2x16xf32>
    %209 = arith.addf %207, %208 : vector<2x16xf32>
    %cst_81 = arith.constant 0.000000e+00 : f32
    %210 = vector.broadcast %cst_81 : f32 to vector<2x16xf32>
    %211 = arith.maximumf %209, %210 : vector<2x16xf32>
    %212 = math.absf %209 : vector<2x16xf32>
    %cst_82 = arith.constant 0.000000e+00 : f32
    %213 = vector.broadcast %cst_82 : f32 to vector<2x16xf32>
    %214 = arith.subf %213, %212 : vector<2x16xf32>
    %215 = math.exp %214 : vector<2x16xf32>
    %216 = math.log1p %215 : vector<2x16xf32>
    %217 = arith.addf %211, %216 : vector<2x16xf32>
    %218 = tpu.iota {dimensions = array<i32: 1>} : vector<2x16xi32>
    %c8_i32_83 = arith.constant 8 : i32
    %219 = vector.broadcast %c8_i32_83 : i32 to vector<2x16xi32>
    %220 = arith.cmpi slt, %218, %219 : vector<2x16xi32>
    %221 = arith.select %220, %209, %217 : vector<2x16xi1>, vector<2x16xf32>
    %222 = vector.extract_strided_slice %0 {offsets = [0, 96], sizes = [2, 16], strides = [1, 1]} : vector<2x128xf32> to vector<2x16xf32>
    %cst_84 = arith.constant dense<0.000000e+00> : vector<2x64xf32>
    %223 = tpu.matmul %222, %62, %cst_84 {dimension_numbers = #tpu.dot_dimension_numbers<[1], [0], [0], [1], [0, 0, 1, 1], [], []>} : vector<2x16xf32>, vector<16x64xf32>, vector<2x64xf32> -> vector<2x64xf32>
    %224 = arith.addf %223, %71 : vector<2x64xf32>
    %cst_85 = arith.constant 0.000000e+00 : f32
    %225 = vector.broadcast %cst_85 : f32 to vector<2x64xf32>
    %226 = arith.maximumf %224, %225 : vector<2x64xf32>
    %cst_86 = arith.constant dense<0.000000e+00> : vector<2x16xf32>
    %227 = tpu.matmul %226, %64, %cst_86 {dimension_numbers = #tpu.dot_dimension_numbers<[1], [0], [0], [1], [0, 0, 1, 1], [], []>} : vector<2x64xf32>, vector<64x16xf32>, vector<2x16xf32> -> vector<2x16xf32>
    %228 = vector.broadcast %66 : vector<1x16xf32> to vector<2x16xf32>
    %229 = arith.addf %227, %228 : vector<2x16xf32>
    %cst_87 = arith.constant 0.000000e+00 : f32
    %230 = vector.broadcast %cst_87 : f32 to vector<2x16xf32>
    %231 = arith.maximumf %229, %230 : vector<2x16xf32>
    %cst_88 = arith.constant dense<0.000000e+00> : vector<2x16xf32>
    %232 = tpu.matmul %231, %65, %cst_88 {dimension_numbers = #tpu.dot_dimension_numbers<[1], [0], [0], [1], [0, 0, 1, 1], [], []>} : vector<2x16xf32>, vector<16x16xf32>, vector<2x16xf32> -> vector<2x16xf32>
    %233 = vector.broadcast %67 : vector<1x16xf32> to vector<2x16xf32>
    %234 = arith.addf %232, %233 : vector<2x16xf32>
    %cst_89 = arith.constant 0.000000e+00 : f32
    %235 = vector.broadcast %cst_89 : f32 to vector<2x16xf32>
    %236 = arith.maximumf %234, %235 : vector<2x16xf32>
    %237 = math.absf %234 : vector<2x16xf32>
    %cst_90 = arith.constant 0.000000e+00 : f32
    %238 = vector.broadcast %cst_90 : f32 to vector<2x16xf32>
    %239 = arith.subf %238, %237 : vector<2x16xf32>
    %240 = math.exp %239 : vector<2x16xf32>
    %241 = math.log1p %240 : vector<2x16xf32>
    %242 = arith.addf %236, %241 : vector<2x16xf32>
    %243 = tpu.iota {dimensions = array<i32: 1>} : vector<2x16xi32>
    %c8_i32_91 = arith.constant 8 : i32
    %244 = vector.broadcast %c8_i32_91 : i32 to vector<2x16xi32>
    %245 = arith.cmpi slt, %243, %244 : vector<2x16xi32>
    %246 = arith.select %245, %234, %242 : vector<2x16xi1>, vector<2x16xf32>
    %247 = vector.extract_strided_slice %0 {offsets = [0, 112], sizes = [2, 16], strides = [1, 1]} : vector<2x128xf32> to vector<2x16xf32>
    %cst_92 = arith.constant dense<0.000000e+00> : vector<2x64xf32>
    %248 = tpu.matmul %247, %62, %cst_92 {dimension_numbers = #tpu.dot_dimension_numbers<[1], [0], [0], [1], [0, 0, 1, 1], [], []>} : vector<2x16xf32>, vector<16x64xf32>, vector<2x64xf32> -> vector<2x64xf32>
    %249 = arith.addf %248, %71 : vector<2x64xf32>
    %cst_93 = arith.constant 0.000000e+00 : f32
    %250 = vector.broadcast %cst_93 : f32 to vector<2x64xf32>
    %251 = arith.maximumf %249, %250 : vector<2x64xf32>
    %cst_94 = arith.constant dense<0.000000e+00> : vector<2x16xf32>
    %252 = tpu.matmul %251, %64, %cst_94 {dimension_numbers = #tpu.dot_dimension_numbers<[1], [0], [0], [1], [0, 0, 1, 1], [], []>} : vector<2x64xf32>, vector<64x16xf32>, vector<2x16xf32> -> vector<2x16xf32>
    %253 = vector.broadcast %66 : vector<1x16xf32> to vector<2x16xf32>
    %254 = arith.addf %252, %253 : vector<2x16xf32>
    %cst_95 = arith.constant 0.000000e+00 : f32
    %255 = vector.broadcast %cst_95 : f32 to vector<2x16xf32>
    %256 = arith.maximumf %254, %255 : vector<2x16xf32>
    %cst_96 = arith.constant dense<0.000000e+00> : vector<2x16xf32>
    %257 = tpu.matmul %256, %65, %cst_96 {dimension_numbers = #tpu.dot_dimension_numbers<[1], [0], [0], [1], [0, 0, 1, 1], [], []>} : vector<2x16xf32>, vector<16x16xf32>, vector<2x16xf32> -> vector<2x16xf32>
    %258 = vector.broadcast %67 : vector<1x16xf32> to vector<2x16xf32>
    %259 = arith.addf %257, %258 : vector<2x16xf32>
    %cst_97 = arith.constant 0.000000e+00 : f32
    %260 = vector.broadcast %cst_97 : f32 to vector<2x16xf32>
    %261 = arith.maximumf %259, %260 : vector<2x16xf32>
    %262 = math.absf %259 : vector<2x16xf32>
    %cst_98 = arith.constant 0.000000e+00 : f32
    %263 = vector.broadcast %cst_98 : f32 to vector<2x16xf32>
    %264 = arith.subf %263, %262 : vector<2x16xf32>
    %265 = math.exp %264 : vector<2x16xf32>
    %266 = math.log1p %265 : vector<2x16xf32>
    %267 = arith.addf %261, %266 : vector<2x16xf32>
    %268 = tpu.iota {dimensions = array<i32: 1>} : vector<2x16xi32>
    %c8_i32_99 = arith.constant 8 : i32
    %269 = vector.broadcast %c8_i32_99 : i32 to vector<2x16xi32>
    %270 = arith.cmpi slt, %268, %269 : vector<2x16xi32>
    %271 = arith.select %270, %259, %267 : vector<2x16xi1>, vector<2x16xf32>
    %272 = tpu.concatenate %96, %121, %146, %171, %196, %221, %246, %271 in 1 : vector<2x16xf32>, vector<2x16xf32>, vector<2x16xf32>, vector<2x16xf32>, vector<2x16xf32>, vector<2x16xf32>, vector<2x16xf32>, vector<2x16xf32> -> vector<2x128xf32>
    %c0_100 = arith.constant 0 : index
    %c0_101 = arith.constant 0 : index
    %273 = vector.load %arg7[%c0_100, %c0_101] : memref<2x128xf32, #tpu.memory_space<vmem>>, vector<2x128xf32>
    tpu.vector_store %arg7[%c0_100, %c0_101], %272 {strides = array<i32>} : memref<2x128xf32, #tpu.memory_space<vmem>>, vector<2x128xf32>,
    return
  }
  func.func @transform_0(%arg0: i32) -> i32 {
    %c0_i32 = arith.constant 0 : i32
    %c0_i32_0 = arith.constant 0 : i32
    return %c0_i32 : i32
  }
  func.func @transform_1(%arg0: i32) -> (i32, i32) {
    %c0_i32 = arith.constant 0 : i32
    %c0_i32_0 = arith.constant 0 : i32
    return %arg0, %c0_i32 : i32, i32
  }
  func.func @transform_2(%arg0: i32) -> (i32, i32) {
    %c0_i32 = arith.constant 0 : i32
    %c0_i32_0 = arith.constant 0 : i32
    return %arg0, %c0_i32 : i32, i32
  }
  func.func @transform_3(%arg0: i32) -> (i32, i32) {
    %c0_i32 = arith.constant 0 : i32
    %c0_i32_0 = arith.constant 0 : i32
    %c0_i32_1 = arith.constant 0 : i32
    return %c0_i32, %c0_i32_0 : i32, i32
  }
  func.func @transform_4(%arg0: i32) -> (i32, i32) {
    %c0_i32 = arith.constant 0 : i32
    %c0_i32_0 = arith.constant 0 : i32
    %c0_i32_1 = arith.constant 0 : i32
    return %c0_i32, %c0_i32_0 : i32, i32
  }
  func.func @transform_5(%arg0: i32) -> (i32, i32) {
    %c0_i32 = arith.constant 0 : i32
    %c0_i32_0 = arith.constant 0 : i32
    return %arg0, %c0_i32 : i32, i32
  }
  func.func @transform_6(%arg0: i32) -> (i32, i32) {
    %c0_i32 = arith.constant 0 : i32
    %c0_i32_0 = arith.constant 0 : i32
    return %arg0, %c0_i32 : i32, i32
  }
}

</mosaic_0001>

<bundles_post_ra>
// kernel: tpu_custom_call.1
= control target key start
LH: loop header
LB: loop body
LE: loop exit
PB: predicated region body
PF: predicated region fallthrough
CT: control target
= control target key end

     0   :  { %13 = vsyncpa [#allocation4], 0  ;;  %v3264_v3 = vmov 0.0|0.0   ;;  %vm3265_vm0 = vmmov 0   ;;  %v3266_v6 = vmov 0.0   ;;  %s3825_s0 = inlined_call_operand.<no memory space> [shape: f32[1], index: 0, kind: input, shape index: {}]   ;;  %s3826_s1 = inlined_call_operand.vmem [shape: f32[2,128], index: 1, kind: input, shape index: {}]   ;;  %s3827_s2 = inlined_call_operand.vmem [shape: f32[2,4], index: 2, kind: input, shape index: {}]   ;;  %s3828_s3 = inlined_call_operand.vmem [shape: f32[360,64], index: 3, kind: input, shape index: {}]   ;;  %s3829_s4 = inlined_call_operand.vmem [shape: f32[8,64], index: 4, kind: input, shape index: {}]   ;;  %s3830_s5 = inlined_call_operand.hbm [shape: f32[2,12], index: 5, kind: output, shape index: {0}]   ;;  %s3831_s6 = inlined_call_operand.hbm [shape: f32[2,128], index: 6, kind: output, shape index: {1}]  }
   0x1   :  { %v26_v0 = vld [vmem:[%s3828_s3] sm:$0xff]  ;;  %v27_v1 = vld [vmem:[%s3828_s3 + $0x8] sm:$0xff]  ;;  %v28_v2 = vld [vmem:[%s3828_s3 + $0x10] sm:$0xff]  ;;  %2962 = vmatprep.subr.bf16.mxu0 %v3264_v3  ;;  %2652 = vmatprep.mubr.msk.f32.mxu0 %vm3265_vm0, %v3266_v6 }
   0x2   :  { %v2963_v4 = vpack.c.bf16 %v27_v1, %v26_v0  ;;  %v29_v5 = vld [vmem:[%s3828_s3 + $0x18] sm:$0xff]  ;;  %2986 = vmatprep.subr.bf16.mxu1 %v3264_v3  ;;  %2671 = vmatprep.mubr.msk.f32.mxu1 %vm3265_vm0, %v3266_v6  ;;  %v30_v8 = vld [vmem:[%s3828_s3 + $0x20] sm:$0xff]  ;;  %v31_v9 = vld [vmem:[%s3828_s3 + $0x28] sm:$0xff] }
   0x3   :  { %v2966_v7 = vpack.c.bf16 %v29_v5, %v28_v2  ;;  %v120_v10 = vld [vmem:[%s3828_s3 + $0x80] sm:$0xff]  ;;  %v121_v11 = vld [vmem:[%s3828_s3 + $0x88] sm:$0xff]  ;;  %v122_v12 = vld [vmem:[%s3828_s3 + $0x90] sm:$0xff]  ;;  %v2969_v14 = vpack.c.bf16 %v31_v9, %v30_v8 }
   0x4   :  { %2964 = vmatpush3.bf16.msra.mxu0 %v2963_v4  ;;  %v123_v13 = vld [vmem:[%s3828_s3 + $0x98] sm:$0xff]  ;;  %v2987_v15 = vpack.c.bf16 %v121_v11, %v120_v10  ;;  %v32_v16 = vld [vmem:[%s3828_s3 + $0x30] sm:$0xff] }
   0x5   :  { %2965 = vmatprep.subr.bf16.mxu0 %v3264_v3  ;;  %v33_v17 = vld [vmem:[%s3828_s3 + $0x38] sm:$0xff] }
   0x8   :  { %2967 = vmatpush3.bf16.msra.mxu0 %v2966_v7 }
   0x9   :  { %2968 = vmatprep.subr.bf16.mxu0 %v3264_v3 }
   0xa   :  { %14 = vsyncpa [#allocation6], 0  ;;  %2988 = vmatpush3.bf16.msra.mxu1 %v2987_v15  ;;  %v2990_v18 = vpack.c.bf16 %v123_v13, %v122_v12  ;;  %v124_v19 = vld [vmem:[%s3828_s3 + $0xa0] sm:$0xff]  ;;  %v125_v20 = vld [vmem:[%s3828_s3 + $0xa8] sm:$0xff]  ;;  %v2972_v21 = vpack.c.bf16 %v33_v17, %v32_v16  ;;  %vm133_vm2 = vcmask 523264   ;;  %v319_v57 = vstv %s3825_s0  ;;  %s3267_s18 = smov 112  }
   0xb   :  { %2989 = vmatprep.subr.bf16.mxu1 %v3264_v3  ;;  %v34_v22 = vld [vmem:[%s3828_s3 + $0x40] sm:$0xff]  ;;  %v35_v23 = vld [vmem:[%s3828_s3 + $0x48] sm:$0xff]  ;;  %v2993_v24 = vpack.c.bf16 %v125_v20, %v124_v19  ;;  %v36_v26 = vld [vmem:[%s3828_s3 + $0x50] sm:$0xff]  ;;  %3170 = vrcp.f32 %v319_v57  ;;  %s3268_s19 = smov 96   ;;  %s3269_s20 = smov 64   ;;  %vm296_vm4 = vcmask 25600  }
   0xc   :  { %2970 = vmatpush3.bf16.msra.mxu0 %v2969_v14  ;;  %v2975_v25 = vpack.c.bf16 %v35_v23, %v34_v22  ;;  %v37_v27 = vld [vmem:[%s3828_s3 + $0x58] sm:$0xff]  ;;  %v38_v29 = vld [vmem:[%s3828_s3 + $0x60] sm:$0xff]  ;;  %v39_v30 = vld [vmem:[%s3828_s3 + $0x68] sm:$0xff]  ;;  %s3270_s21 = smov 48   ;;  %s3271_s0 = smov 32   ;;  %vm371_vm5 = vcmask 1043456  }
   0xd   :  { %2971 = vmatprep.subr.bf16.mxu0 %v3264_v3  ;;  %v2978_v28 = vpack.c.bf16 %v37_v27, %v36_v26  ;;  %v2981_v31 = vpack.c.bf16 %v39_v30, %v38_v29  ;;  %v40_v32 = vld [vmem:[%s3828_s3 + $0x70] sm:$0xff]  ;;  %v41_v33 = vld [vmem:[%s3828_s3 + $0x78] sm:$0xff]  ;;  %v3398_v35 = vld [vmem:[%s3826_s1] sm:$0x3]  ;;  %s3272_s22 = smov 16   ;;  %vm445_vm6 = vcmask 130048  }
   0xe   :  { %2991 = vmatpush3.bf16.msra.mxu1 %v2990_v18  ;;  %v2984_v34 = vpack.c.bf16 %v41_v33, %v40_v32  ;;  %v126_v36 = vld [vmem:[%s3828_s3 + $0xb0] sm:$0xff]  ;;  %v127_v37 = vld [vmem:[%s3828_s3 + $0xb8] sm:$0xff]  ;;  %v2429_v39 = vld [vmem:[%s3829_s4] ss:$0 sm:$0xff]  ;;  %694 = vrot.lane.b32.xlu1 %v3398_v35, %s3267_s18  ;;  %vm343_vm7 = vcmask 31744   ;;  %s3274_s23 = smov 4  }
   0xf   :  { %2992 = vmatprep.subr.bf16.mxu1 %v3264_v3  ;;  %v2996_v38 = vpack.c.bf16 %v127_v37, %v126_v36  ;;  %v210_v41 = vld [vmem:[%s3828_s3 + $0xc0] sm:$0xff]  ;;  %v211_v42 = vld [vmem:[%s3828_s3 + $0xc8] sm:$0xff]  ;;  %v212_v47 = vld [vmem:[%s3828_s3 + $0xd0] sm:$0xff]  ;;  %vm2389_vm14 = vcmask 261120   ;;  %vm2391_vm15 = vcmask 392192  }
  0x10   :  { %2973 = vmatpush3.bf16.msra.mxu0 %v2972_v21  ;;  %v2999_v46 = vpack.c.bf16 %v211_v42, %v210_v41  ;;  %v213_v48 = vld [vmem:[%s3828_s3 + $0xd8] sm:$0xff]  ;;  %v214_v51 = vld [vmem:[%s3828_s3 + $0xe0] sm:$0xff]  ;;  %v215_v52 = vld [vmem:[%s3828_s3 + $0xe8] sm:$0xff] }
  0x11   :  { %2974 = vmatprep.subr.bf16.mxu0 %v3264_v3  ;;  %v3002_v50 = vpack.c.bf16 %v213_v48, %v212_v47  ;;  %v3005_v53 = vpack.c.bf16 %v215_v52, %v214_v51  ;;  %v216_v54 = vld [vmem:[%s3828_s3 + $0xf0] sm:$0xff]  ;;  %v217_v55 = vld [vmem:[%s3828_s3 + $0xf8] sm:$0xff]  ;;  %v2430_v59 = vld [vmem:[%s3829_s4 + $0x1] ss:$0 sm:$0xff] }
  0x12   :  { %2994 = vmatpush3.bf16.msra.mxu1 %v2993_v24  ;;  %v3008_v56 = vpack.c.bf16 %v217_v55, %v216_v54  ;;  %932 = vrot.lane.b32.xlu1 %v3398_v35, %s3268_s19  ;;  %v308_v1 = vld [vmem:[%s3827_s2] sm:$0x3]  ;;  %v2432_v11 = vld [vmem:[%s3829_s4 + $0x2] ss:$0 sm:$0xff]  ;;  %s3273_s2 = smov 80   ;;  %v350_v33 = vld [vmem:[%s3828_s3 + $0x108] sm:$0xff] }
  0x13   :  { %2995 = vmatprep.subr.bf16.mxu1 %v3264_v3  ;;  %v309_v2 = vadd.f32 1e-20, %v308_v1  ;;  %v349_v32 = vld [vmem:[%s3828_s3 + $0x100] sm:$0xff]  ;;  %v351_v36 = vld [vmem:[%s3828_s3 + $0x110] sm:$0xf]  ;;  %v354_v48 = vld [vmem:[%s3828_s3 + $0x128] sm:$0xff] }
  0x14   :  { %2976 = vmatpush3.bf16.msra.mxu0 %v2975_v25  ;;  %v353_v47 = vld [vmem:[%s3828_s3 + $0x120] sm:$0xff]  ;;  %v356_v54 = vld [vmem:[%s3828_s3 + $0x138] sm:$0xff] }
  0x15   :  { %2977 = vmatprep.subr.bf16.mxu0 %v3264_v3  ;;  %v3171_v58 = vpop.eup %3170  ;;  %3172 = vlog2.f32 %v309_v2  ;;  %v357_v55 = vld [vmem:[%s3828_s3 + $0x140] sm:$0xff] }
  0x16   :  { %2997 = vmatpush3.bf16.msra.mxu1 %v2996_v38  ;;  %1408 = vrot.lane.b32.xlu1 %v3398_v35, %s3269_s20  ;;  %3154 = vpush %v3171_v58  ;;  %v358_v58 = vld [vmem:[%s3828_s3 + $0x148] sm:$0xff] }
  0x17   :  { %2998 = vmatprep.subr.bf16.mxu1 %v3264_v3 }
  0x18   :  { %2979 = vmatpush3.bf16.msra.mxu0 %v2978_v28 }
  0x19   :  { %2980 = vmatprep.subr.bf16.mxu0 %v3264_v3 }
  0x1a   :  { %1646 = vrot.lane.b32.xlu1 %v3398_v35, %s3270_s21 }
  0x1c   :  { %2982 = vmatpush3.bf16.msra.mxu0 %v2981_v31 }
  0x1d   :  { %2983 = vmatprep.subr.bf16.mxu0 %v3264_v3 }
  0x1e   :  { %1884 = vrot.lane.b32.xlu1 %v3398_v35, %s3271_s0 }
  0x1f   :  { %v3173_v4 = vpop.eup %3172 }
  0x20   :  { %2985 = vmatpush3.bf16.msra.mxu0 %v2984_v34  ;;  %v311_v5 = vmul.f32 0.6931472, %v3173_v4  ;;  %v3499_v34 = vpack.c.bf16 %v350_v33, %v349_v32 }
  0x21   :  { %2693 = vmatprep.subr.mxu0 %v3266_v6 }
  0x22   :  { %2122 = vrot.lane.b32.xlu1 %v3398_v35, %s3272_s22  ;;  %v312_v7 = vsub.f32 0.0, %v311_v5  ;;  %v360_v5 = vld [vmem:[%s3828_s3 + $0x158] sm:$0xff] }
  0x23   :  { %2653 = vmatmul.mubr.f32.vlgmr.msra.gmra.mrb[0].mxu0 %v3398_v35 }
  0x24   :  { %2695 = vmatprep.mubr.msk.f32.mxu0 %vm3265_vm0, %v3266_v6  ;;  %v313_v8 = vadd.f32 1e-20, %v312_v7  ;;  %2694 = vmatpush3.msk.msra.mxu0 %vm371_vm5, %v351_v36  ;;  %v361_v7 = vld [vmem:[%s3828_s3 + $0x160] sm:$0xff] }
  0x25   :  { %3013 = vmatprep.subr.bf16.mxu0 %v3264_v3 }
  0x26   :  { %3174 = vlog2.f32 %v313_v8  ;;  %v3576_v8 = vpack.c.bf16 %v361_v7, %v360_v5 }
  0x30   :  { %v3175_v9 = vpop.eup %3174 }
  0x31   :  { %v315_v10 = vmul.f32 0.6931472, %v3175_v9  ;;  %v3585_v9 = vld [vmem:[%s3829_s4 + $0x4] ss:$0 sm:$0xff] }
  0x33   :  { %v316_v12 = vsub.f32 0.0, %v315_v10 }
  0x47   :  { %s3155_s28 = spop %3154 }
  0x48   :  { %v322_v16 = vstv %s3155_s28 }
  0x80   :  { %v3478_v24 = vpop.permute.xlu1 %694 }
  0x84   :  { %v3480_v26 = vpop.permute.xlu1 %932 }
  0x88   :  { %v3483_v28 = vpop.permute.xlu1 %1408 }
  0x8c   :  { %v3485_v29 = vpop.permute.xlu1 %1646 }
  0x90   :  { %v3487_v30 = vpop.permute.xlu1 %1884 }
  0x94   :  { %v3489_v31 = vpop.permute.xlu1 %2122 }
  0xf6   :  { %v113_v40 = vpop.f32.mrb[0].mxu0 }
  0xf7   :  { %v114_v43 = vadd.f32 %v2429_v39, %v113_v40  ;;  %v2654_v44 = vpop.f32.mrb[1].mxu0 }
  0xf9   :  { %vm117_vm1 = vcmp.gt.f32.partialorder %v114_v43, 0.0  ;;  %v118_v45 = vmul.f32 0.2, %v114_v43 }
  0xfb   :  { %v119_v49 = vsel %vm117_vm1, %v114_v43, %v118_v45  ;;  %vm345_vm1 = vcmask 64512  }
  0xfc   :  { %2672 = vmatmul.mubr.msk.f32.vlgmr.msra.gmra.mrb[0].mxu1 %vm133_vm2, %v119_v49 }
  0xfd   :  { %3000 = vmatpush3.bf16.msra.mxu1 %v2999_v46  ;;  %2690 = vmatprep.mubr.msk.f32.mxu1 %vm3265_vm0, %v3266_v6  ;;  %v352_v46 = vld [vmem:[%s3828_s3 + $0x118] sm:$0xff] }
  0xfe   :  { %3001 = vmatprep.subr.bf16.mxu1 %v3264_v3  ;;  %v3530_v49 = vpack.c.bf16 %v353_v47, %v352_v46  ;;  %v690_v46 = vlaneseq }
 0x101   :  { %3003 = vmatpush3.bf16.msra.mxu1 %v3002_v50  ;;  %v355_v50 = vld [vmem:[%s3828_s3 + $0x130] sm:$0xff] }
 0x102   :  { %3004 = vmatprep.subr.bf16.mxu1 %v3264_v3  ;;  %v3536_v51 = vpack.c.bf16 %v355_v50, %v354_v48 }
 0x105   :  { %3006 = vmatpush3.bf16.msra.mxu1 %v3005_v53 }
 0x106   :  { %3007 = vmatprep.subr.bf16.mxu1 %v3264_v3 }
 0x109   :  { %3009 = vmatpush3.bf16.msra.mxu1 %v3008_v56  ;;  %v3547_v56 = vpack.c.bf16 %v357_v55, %v356_v54 }
 0x10a   :  { %3010 = vmatprep.subr.bf16.mxu1 %v3264_v3 }
 0x1cf   :  { %v203_v60 = vpop.f32.mrb[0].mxu1 }
 0x1d0   :  { %v204_v61 = vadd.f32 %v2430_v59, %v203_v60  ;;  %v2673_v62 = vpop.f32.mrb[1].mxu1  ;;  %v359_v59 = vld [vmem:[%s3828_s3 + $0x150] sm:$0xff] }
 0x1d1   :  { %v2434_v62 = vld [vmem:[%s3829_s4 + $0x3] ss:$0 sm:$0xff] }
 0x1d2   :  { %vm207_vm3 = vcmp.gt.f32.partialorder %v204_v61, 0.0  ;;  %v208_v63 = vmul.f32 0.2, %v204_v61 }
 0x1d4   :  { %v209_v0 = vsel %vm207_vm3, %v204_v61, %v208_v63  ;;  %v3557_v61 = vpack.c.bf16 %v359_v59, %v358_v58  ;;  %vm347_vm3 = vcmask 91136  }
 0x1d5   :  { %2691 = vmatmul.mubr.msk.f32.vlgmr.msra.gmra.mrb[2].mxu1 %vm133_vm2, %v209_v0 }
 0x1d6   :  { %2702 = vmatprep.mubr.msk.f32.mxu1 %vm3265_vm0, %v3266_v6  ;;  %3012 = vmatpush3.bf16.msra.mxu1 %v3499_v34 }
 0x1d7   :  { %3025 = vmatprep.subr.bf16.mxu1 %v3264_v3 }
 0x1d9   :  { %2703 = vmatmul.mubr.msk.f32.vlgmr.msra.gmra.mrb[4].mxu1 %vm445_vm6, %v3398_v35 }
 0x1da   :  { %2728 = vmatprep.mubr.msk.f32.mxu1 %vm3265_vm0, %v3266_v6  ;;  %3027 = vmatpush3.bf16.msra.mxu1 %v3576_v8 }
 0x1db   :  { %3028 = vmatprep.subr.bf16.mxu1 %v3264_v3 }
 0x2a8   :  { %v292_v13 = vpop.f32.mrb[2].mxu1 }
 0x2a9   :  { %v3472_v14 = vadd.f32 %v2432_v11, %v292_v13  ;;  %v2692_v15 = vpop.f32.mrb[3].mxu1 }
 0x2ab   :  { %v317_v17 = vadd.f32 %v316_v12, %v3472_v14  ;;  %v297_v18 = vsel %vm296_vm4, %v3472_v14, -inf }
 0x2ac   :  { %298 = vmax.xlane.f32.xlu1 %v297_v18  ;;  %v515_v57 = vpop.f32.mrb[4].mxu1 }
 0x2ad   :  { %v323_v19 = vmul.f32 %v322_v16, %v317_v17  ;;  %v2704_v60 = vpop.f32.mrb[5].mxu1 }
 0x2af   :  { %v324_v20 = vsel %vm296_vm4, %v323_v19, -inf }
 0x2b0   :  { %325 = vmax.xlane.f32.xlu0 %v324_v20 }
 0x339   :  { %v299_v37 = vpop.xlane.xlu1 %298 }
 0x33a   :  { %v300_v38 = vsub.f32 %v3472_v14, %v299_v37 }
 0x33c   :  { %v301_v39 = vmul.f32 1.442695, %v300_v38 }
 0x33d   :  { %v326_v21 = vpop.xlane.xlu0 %325 }
 0x33e   :  { %v327_v22 = vsub.f32 %v323_v19, %v326_v21 }
 0x340   :  { %v328_v23 = vmul.f32 1.442695, %v327_v22 }
 0x342   :  { %3176 = vpow2.f32 %v328_v23 }
 0x343   :  { %3178 = vpow2.f32 %v301_v39 }
 0x34c   :  { %v3177_v25 = vpop.eup %3176 }
 0x34d   :  { %v330_v27 = vsel %vm296_vm4, %v3177_v25, 0.0  ;;  %v3179_v40 = vpop.eup %3178 }
 0x34e   :  { %331 = vadd.xlane.f32.xlu0 %v330_v27  ;;  %v303_v41 = vsel %vm296_vm4, %v3179_v40, 0.0 }
 0x364   :  { %1170 = vrot.lane.b32.xlu0 %v3398_v35, %s3273_s2 }
 0x383   :  { %304 = vadd.xlane.f32.xlu0 %v303_v41 }
 0x3db   :  { %v332_v42 = vpop.xlane.xlu0 %331 }
 0x3dc   :  { %3180 = vrcp.f32 %v332_v42 }
 0x3df   :  { %v3519_v35 = vpop.permute.xlu0 %1170 }
 0x3e6   :  { %v3181_v43 = vpop.eup %3180 }
 0x3e7   :  { %v3513_v44 = vmul.f32 %v3181_v43, %v3177_v25  ;;  %v3634_v25 = vld [vmem:[%s3829_s4 + $0x5] ss:$0 sm:$0xff]  ;;  %s3275_s4 = smov 8  }
 0x3e9   :  { %2696 = vmatmul.mubr.msk.f32.vlgmr.msra.gmra.mrb[2].mxu0 %vm343_vm7, %v3513_v44 }
 0x3ea   :  { %2721 = vmatprep.mubr.msk.f32.mxu0 %vm3265_vm0, %v3266_v6  ;;  %3015 = vmatpush3.bf16.msra.mxu0 %v3530_v49 }
 0x3eb   :  { %3016 = vmatprep.subr.bf16.mxu0 %v3264_v3 }
 0x3ee   :  { %3018 = vmatpush3.bf16.msra.mxu0 %v3536_v51 }
 0x3ef   :  { %3019 = vmatprep.subr.bf16.mxu0 %v3264_v3 }
 0x3f2   :  { %3021 = vmatpush3.bf16.msra.mxu0 %v3547_v56 }
 0x3f3   :  { %3022 = vmatprep.subr.bf16.mxu0 %v3264_v3 }
 0x3f6   :  { %3024 = vmatpush3.bf16.msra.mxu0 %v3557_v61 }
 0x3f7   :  { %3043 = vmatprep.subr.bf16.mxu0 %v3264_v3 }
 0x410   :  { %v305_v45 = vpop.xlane.xlu0 %304 }
 0x411   :  { %3182 = vrcp.f32 %v305_v45 }
 0x41b   :  { %v3183_v52 = vpop.eup %3182 }
 0x41c   :  { %v307_v53 = vmul.f32 %v3183_v52, %v3179_v40  ;;  %v3643_v52 = vand.u32 127, %v690_v46 }
 0x41e   :  { %336 = vrot.lane.b32.xlu1 %v307_v53, %s3274_s23  ;;  %vm692_vm9 = vcmp.lt.s32.totalorder %v3643_v52, 8 }
 0x4bc   :  { %v441_v63 = vpop.f32.mrb[2].mxu0 }
 0x4bd   :  { %v3564_v0 = vadd.f32 %v2434_v62, %v441_v63  ;;  %v2697_v1 = vpop.f32.mrb[3].mxu0 }
 0x4bf   :  { %v516_v2 = vadd.f32 %v515_v57, %v3564_v0 }
 0x4c1   :  { %v519_v4 = vmax.f32 %v516_v2, 0.0 }
 0x4c3   :  { %2722 = vmatmul.mubr.msk.f32.vlgmr.msra.gmra.mrb[4].mxu0 %vm133_vm2, %v519_v4 }
 0x4c4   :  { %2761 = vmatprep.mubr.msk.f32.mxu0 %vm3265_vm0, %v3266_v6  ;;  %3045 = vmatpush3.bf16.msra.mxu0 %v3576_v8 }
 0x4c5   :  { %3046 = vmatprep.subr.bf16.mxu0 %v3264_v3 }
 0x596   :  { %v593_v10 = vpop.f32.mrb[4].mxu0 }
 0x597   :  { %v594_v11 = vadd.f32 %v3585_v9, %v593_v10  ;;  %v2723_v12 = vpop.f32.mrb[5].mxu0 }
 0x599   :  { %v597_v13 = vmax.f32 %v594_v11, 0.0 }
 0x59b   :  { %2729 = vmatmul.mubr.msk.f32.vlgmr.msra.gmra.mrb[6].mxu1 %vm445_vm6, %v597_v13 }
 0x59c   :  { %3030 = vmatpush3.bf16.msra.mxu1 %v3499_v34  ;;  %2735 = vmatprep.mubr.msk.f32.mxu1 %vm3265_vm0, %v3266_v6 }
 0x59d   :  { %3031 = vmatprep.subr.bf16.mxu1 %v3264_v3 }
 0x59f   :  { %2736 = vmatmul.mubr.msk.f32.vlgmr.msra.gmra.mrb[8].mxu1 %vm445_vm6, %v3478_v24 }
 0x5a0   :  { %3033 = vmatpush3.bf16.msra.mxu1 %v3530_v49  ;;  %2754 = vmatprep.mubr.msk.f32.mxu1 %vm3265_vm0, %v3266_v6 }
 0x5a1   :  { %3034 = vmatprep.subr.bf16.mxu1 %v3264_v3 }
 0x5a4   :  { %3036 = vmatpush3.bf16.msra.mxu1 %v3536_v51 }
 0x5a5   :  { %3037 = vmatprep.subr.bf16.mxu1 %v3264_v3 }
 0x5a8   :  { %3039 = vmatpush3.bf16.msra.mxu1 %v3547_v56 }
 0x5a9   :  { %3040 = vmatprep.subr.bf16.mxu1 %v3264_v3 }
 0x5ac   :  { %3042 = vmatpush3.bf16.msra.mxu1 %v3557_v61 }
 0x5ad   :  { %3061 = vmatprep.subr.bf16.mxu1 %v3264_v3 }
 0x66e   :  { %v3605_v15 = vpop.f32.mrb[6].mxu1 }
 0x66f   :  { %v2730_v16 = vpop.f32.mrb[7].mxu1 }
 0x672   :  { %v764_v17 = vpop.f32.mrb[8].mxu1 }
 0x673   :  { %v765_v18 = vadd.f32 %v764_v17, %v3564_v0  ;;  %v2737_v19 = vpop.f32.mrb[9].mxu1 }
 0x675   :  { %v768_v20 = vmax.f32 %v765_v18, 0.0 }
 0x677   :  { %2755 = vmatmul.mubr.msk.f32.vlgmr.msra.gmra.mrb[10].mxu1 %vm133_vm2, %v768_v20 }
 0x678   :  { %3063 = vmatpush3.bf16.msra.mxu1 %v3576_v8  ;;  %2794 = vmatprep.mubr.msk.f32.mxu1 %vm3265_vm0, %v3266_v6 }
 0x679   :  { %3064 = vmatprep.subr.bf16.mxu1 %v3264_v3 }
 0x74a   :  { %v838_v21 = vpop.f32.mrb[10].mxu1 }
 0x74b   :  { %v839_v22 = vadd.f32 %v3585_v9, %v838_v21  ;;  %v2756_v23 = vpop.f32.mrb[11].mxu1 }
 0x74d   :  { %v842_v24 = vmax.f32 %v839_v22, 0.0 }
 0x74f   :  { %2762 = vmatmul.mubr.msk.f32.vlgmr.msra.gmra.mrb[6].mxu0 %vm445_vm6, %v842_v24 }
 0x750   :  { %3048 = vmatpush3.bf16.msra.mxu0 %v3499_v34  ;;  %2768 = vmatprep.mubr.msk.f32.mxu0 %vm3265_vm0, %v3266_v6 }
 0x751   :  { %3049 = vmatprep.subr.bf16.mxu0 %v3264_v3 }
 0x753   :  { %2769 = vmatmul.mubr.msk.f32.vlgmr.msra.gmra.mrb[8].mxu0 %vm445_vm6, %v3480_v26 }
 0x754   :  { %3051 = vmatpush3.bf16.msra.mxu0 %v3530_v49  ;;  %2787 = vmatprep.mubr.msk.f32.mxu0 %vm3265_vm0, %v3266_v6 }
 0x755   :  { %3052 = vmatprep.subr.bf16.mxu0 %v3264_v3 }
 0x758   :  { %3054 = vmatpush3.bf16.msra.mxu0 %v3536_v51 }
 0x759   :  { %3055 = vmatprep.subr.bf16.mxu0 %v3264_v3 }
 0x75c   :  { %3057 = vmatpush3.bf16.msra.mxu0 %v3547_v56 }
 0x75d   :  { %3058 = vmatprep.subr.bf16.mxu0 %v3264_v3 }
 0x760   :  { %3060 = vmatpush3.bf16.msra.mxu0 %v3557_v61 }
 0x761   :  { %3079 = vmatprep.subr.bf16.mxu0 %v3264_v3 }
 0x822   :  { %v912_v26 = vpop.f32.mrb[6].mxu0 }
 0x823   :  { %v913_v27 = vadd.f32 %v3634_v25, %v912_v26  ;;  %v2763_v32 = vpop.f32.mrb[7].mxu0 }
 0x825   :  { %v917_v33 = vand.u32 2147483647, %v913_v27  ;;  %v916_v55 = vmax.f32 %v913_v27, 0.0 }
 0x826   :  { %v1002_v36 = vpop.f32.mrb[8].mxu0 }
 0x827   :  { %v918_v37 = vsub.f32 0.0, %v917_v33  ;;  %v1003_v38 = vadd.f32 %v1002_v36, %v3564_v0  ;;  %v2770_v39 = vpop.f32.mrb[9].mxu0 }
 0x829   :  { %v919_v40 = vmul.f32 1.442695, %v918_v37  ;;  %v1006_v41 = vmax.f32 %v1003_v38, 0.0 }
 0x82b   :  { %3184 = vpow2.f32 %v919_v40  ;;  %2788 = vmatmul.mubr.msk.f32.vlgmr.msra.gmra.mrb[10].mxu0 %vm133_vm2, %v1006_v41 }
 0x82c   :  { %3081 = vmatpush3.bf16.msra.mxu0 %v3576_v8  ;;  %2827 = vmatprep.mubr.msk.f32.mxu0 %vm3265_vm0, %v3266_v6 }
 0x82d   :  { %3082 = vmatprep.subr.bf16.mxu0 %v3264_v3 }
 0x835   :  { %v3185_v42 = vpop.eup %3184 }
 0x836   :  { %v921_v43 = vadd.f32 1.0, %v3185_v42  ;;  %v924_v45 = vmul.f32 -0.5, %v3185_v42  ;;  %v927_v48 = vand.u32 2147483647, %v3185_v42 }
 0x838   :  { %3186 = vlog2.f32 %v921_v43  ;;  %v925_v47 = vadd.f32 1.0, %v924_v45  ;;  %vm928_vm8 = vcmp.lt.f32.partialorder %v927_v48, 0.0004427343 }
 0x83a   :  { %v926_v54 = vmul.f32 %v3185_v42, %v925_v47 }
 0x842   :  { %v3187_v50 = vpop.eup %3186 }
 0x843   :  { %v923_v53 = vmul.f32 0.6931472, %v3187_v50 }
 0x845   :  { %v929_v57 = vsel %vm928_vm8, %v926_v54, %v923_v53 }
 0x846   :  { %v930_v58 = vadd.f32 %v929_v57, %v916_v55 }
 0x848   :  { %v931_v59 = vsel %vm692_vm9, %v913_v27, %v930_v58 }
 0x849   :  { %2361 = vrot.lane.b32.xlu1 %v931_v59, %s3272_s22 }
 0x8fe   :  { %v1076_v60 = vpop.f32.mrb[10].mxu0 }
 0x8ff   :  { %v1077_v62 = vadd.f32 %v3585_v9, %v1076_v60  ;;  %v2789_v63 = vpop.f32.mrb[11].mxu0 }
 0x901   :  { %v1080_v1 = vmax.f32 %v1077_v62, 0.0 }
 0x903   :  { %2795 = vmatmul.mubr.msk.f32.vlgmr.msra.gmra.mrb[12].mxu1 %vm445_vm6, %v1080_v1 }
 0x904   :  { %3066 = vmatpush3.bf16.msra.mxu1 %v3499_v34  ;;  %2801 = vmatprep.mubr.msk.f32.mxu1 %vm3265_vm0, %v3266_v6 }
 0x905   :  { %3067 = vmatprep.subr.bf16.mxu1 %v3264_v3 }
 0x907   :  { %2802 = vmatmul.mubr.msk.f32.vlgmr.msra.gmra.mrb[14].mxu1 %vm445_vm6, %v3519_v35 }
 0x908   :  { %3069 = vmatpush3.bf16.msra.mxu1 %v3530_v49  ;;  %2820 = vmatprep.mubr.msk.f32.mxu1 %vm3265_vm0, %v3266_v6 }
 0x909   :  { %3070 = vmatprep.subr.bf16.mxu1 %v3264_v3 }
 0x90c   :  { %3072 = vmatpush3.bf16.msra.mxu1 %v3536_v51 }
 0x90d   :  { %3073 = vmatprep.subr.bf16.mxu1 %v3264_v3 }
 0x910   :  { %3075 = vmatpush3.bf16.msra.mxu1 %v3547_v56 }
 0x911   :  { %3076 = vmatprep.subr.bf16.mxu1 %v3264_v3 }
 0x914   :  { %3078 = vmatpush3.bf16.msra.mxu1 %v3557_v61 }
 0x915   :  { %3097 = vmatprep.subr.bf16.mxu1 %v3264_v3 }
 0x9d6   :  { %v1150_v35 = vpop.f32.mrb[12].mxu1 }
 0x9d7   :  { %v1151_v2 = vadd.f32 %v3634_v25, %v1150_v35  ;;  %v2796_v4 = vpop.f32.mrb[13].mxu1 }
 0x9d9   :  { %v1155_v5 = vand.u32 2147483647, %v1151_v2  ;;  %v1154_v26 = vmax.f32 %v1151_v2, 0.0 }
 0x9da   :  { %v1240_v7 = vpop.f32.mrb[14].mxu1 }
 0x9db   :  { %v1156_v10 = vsub.f32 0.0, %v1155_v5  ;;  %v1241_v11 = vadd.f32 %v1240_v7, %v3564_v0  ;;  %v2803_v12 = vpop.f32.mrb[15].mxu1 }
 0x9dd   :  { %v1157_v13 = vmul.f32 1.442695, %v1156_v10  ;;  %v1244_v16 = vmax.f32 %v1241_v11, 0.0 }
 0x9df   :  { %3188 = vpow2.f32 %v1157_v13  ;;  %2821 = vmatmul.mubr.msk.f32.vlgmr.msra.gmra.mrb[16].mxu1 %vm133_vm2, %v1244_v16 }
 0x9e0   :  { %3099 = vmatpush3.bf16.msra.mxu1 %v3576_v8  ;;  %2860 = vmatprep.mubr.msk.f32.mxu1 %vm3265_vm0, %v3266_v6 }
 0x9e1   :  { %3100 = vmatprep.subr.bf16.mxu1 %v3264_v3 }
 0x9e9   :  { %v3189_v17 = vpop.eup %3188 }
 0x9ea   :  { %v1159_v18 = vadd.f32 1.0, %v3189_v17  ;;  %v1162_v19 = vmul.f32 -0.5, %v3189_v17  ;;  %v1165_v21 = vand.u32 2147483647, %v3189_v17 }
 0x9ec   :  { %3190 = vlog2.f32 %v1159_v18  ;;  %v1163_v20 = vadd.f32 1.0, %v1162_v19  ;;  %vm1166_vm10 = vcmp.lt.f32.partialorder %v1165_v21, 0.0004427343 }
 0x9ee   :  { %v1164_v24 = vmul.f32 %v3189_v17, %v1163_v20 }
 0x9f6   :  { %v3191_v22 = vpop.eup %3190 }
 0x9f7   :  { %v1161_v23 = vmul.f32 0.6931472, %v3191_v22 }
 0x9f9   :  { %v1167_v27 = vsel %vm1166_vm10, %v1164_v24, %v1161_v23 }
 0x9fa   :  { %v1168_v32 = vadd.f32 %v1167_v27, %v1154_v26 }
 0x9fc   :  { %v1169_v33 = vsel %vm692_vm9, %v1151_v2, %v1168_v32 }
 0x9fd   :  { %2365 = vrot.lane.b32.xlu0 %v1169_v33, %s3271_s0 }
 0xab2   :  { %v1314_v36 = vpop.f32.mrb[16].mxu1 }
 0xab3   :  { %v1315_v37 = vadd.f32 %v3585_v9, %v1314_v36  ;;  %v2822_v38 = vpop.f32.mrb[17].mxu1 }
 0xab5   :  { %v1318_v39 = vmax.f32 %v1315_v37, 0.0 }
 0xab7   :  { %2828 = vmatmul.mubr.msk.f32.vlgmr.msra.gmra.mrb[12].mxu0 %vm445_vm6, %v1318_v39 }
 0xab8   :  { %3084 = vmatpush3.bf16.msra.mxu0 %v3499_v34  ;;  %2834 = vmatprep.mubr.msk.f32.mxu0 %vm3265_vm0, %v3266_v6 }
 0xab9   :  { %3085 = vmatprep.subr.bf16.mxu0 %v3264_v3 }
 0xabb   :  { %2835 = vmatmul.mubr.msk.f32.vlgmr.msra.gmra.mrb[14].mxu0 %vm445_vm6, %v3483_v28 }
 0xabc   :  { %3087 = vmatpush3.bf16.msra.mxu0 %v3530_v49  ;;  %2853 = vmatprep.mubr.msk.f32.mxu0 %vm3265_vm0, %v3266_v6 }
 0xabd   :  { %3088 = vmatprep.subr.bf16.mxu0 %v3264_v3 }
 0xac0   :  { %3090 = vmatpush3.bf16.msra.mxu0 %v3536_v51 }
 0xac1   :  { %3091 = vmatprep.subr.bf16.mxu0 %v3264_v3 }
 0xac4   :  { %3093 = vmatpush3.bf16.msra.mxu0 %v3547_v56 }
 0xac5   :  { %3094 = vmatprep.subr.bf16.mxu0 %v3264_v3 }
 0xac8   :  { %3096 = vmatpush3.bf16.msra.mxu0 %v3557_v61 }
 0xac9   :  { %3115 = vmatprep.subr.bf16.mxu0 %v3264_v3 }
 0xb8a   :  { %v1388_v28 = vpop.f32.mrb[12].mxu0 }
 0xb8b   :  { %v1389_v40 = vadd.f32 %v3634_v25, %v1388_v28  ;;  %v2829_v41 = vpop.f32.mrb[13].mxu0 }
 0xb8d   :  { %v1393_v42 = vand.u32 2147483647, %v1389_v40  ;;  %v1392_v63 = vmax.f32 %v1389_v40, 0.0 }
 0xb8e   :  { %v1478_v43 = vpop.f32.mrb[14].mxu0 }
 0xb8f   :  { %v1394_v45 = vsub.f32 0.0, %v1393_v42  ;;  %v1479_v46 = vadd.f32 %v1478_v43, %v3564_v0  ;;  %v2836_v47 = vpop.f32.mrb[15].mxu0 }
 0xb91   :  { %v1395_v48 = vmul.f32 1.442695, %v1394_v45  ;;  %v1482_v50 = vmax.f32 %v1479_v46, 0.0 }
 0xb93   :  { %3192 = vpow2.f32 %v1395_v48  ;;  %2854 = vmatmul.mubr.msk.f32.vlgmr.msra.gmra.mrb[16].mxu0 %vm133_vm2, %v1482_v50 }
 0xb94   :  { %3117 = vmatpush3.bf16.msra.mxu0 %v3576_v8  ;;  %2893 = vmatprep.mubr.msk.f32.mxu0 %vm3265_vm0, %v3266_v6 }
 0xb95   :  { %3118 = vmatprep.subr.bf16.mxu0 %v3264_v3 }
 0xb9d   :  { %v3193_v53 = vpop.eup %3192 }
 0xb9e   :  { %v1397_v54 = vadd.f32 1.0, %v3193_v53  ;;  %v1400_v55 = vmul.f32 -0.5, %v3193_v53  ;;  %v1403_v58 = vand.u32 2147483647, %v3193_v53 }
 0xba0   :  { %3194 = vlog2.f32 %v1397_v54  ;;  %v1401_v57 = vadd.f32 1.0, %v1400_v55  ;;  %vm1404_vm11 = vcmp.lt.f32.partialorder %v1403_v58, 0.0004427343  ;;  %v337_v55 = vpop.permute.xlu1 %336 }
 0xba2   :  { %v1402_v62 = vmul.f32 %v3193_v53, %v1401_v57 }
 0xbaa   :  { %v3195_v59 = vpop.eup %3194 }
 0xbab   :  { %v1399_v60 = vmul.f32 0.6931472, %v3195_v59  ;;  %v2362_v59 = vpop.permute.xlu1 %2361 }
 0xbad   :  { %v1405_v1 = vsel %vm1404_vm11, %v1402_v62, %v1399_v60 }
 0xbae   :  { %v1406_v35 = vadd.f32 %v1405_v1, %v1392_v63 }
 0xbb0   :  { %v1407_v2 = vsel %vm692_vm9, %v1389_v40, %v1406_v35  ;;  %v672_v40 = vadd.f32 %v3634_v25, %v3605_v15  ;;  %v2366_v15 = vpop.permute.xlu0 %2365 }
 0xbb1   :  { %2369 = vrot.lane.b32.xlu1 %v1407_v2, %s3270_s21 }
 0xbb2   :  { %v676_v41 = vand.u32 2147483647, %v672_v40 }
 0xbb4   :  { %v677_v42 = vsub.f32 0.0, %v676_v41 }
 0xbb6   :  { %v678_v43 = vmul.f32 1.442695, %v677_v42 }
 0xc23   :  { %v2370_v62 = vpop.permute.xlu1 %2369 }
 0xc66   :  { %v1552_v4 = vpop.f32.mrb[16].mxu0 }
 0xc67   :  { %v1553_v5 = vadd.f32 %v3585_v9, %v1552_v4  ;;  %v2855_v7 = vpop.f32.mrb[17].mxu0 }
 0xc68   :  { %v344_v7 = vsel %vm343_vm7, %v3472_v14, %v337_v55 }
 0xc69   :  { %v1556_v10 = vmax.f32 %v1553_v5, 0.0 }
 0xc6b   :  { %2861 = vmatmul.mubr.msk.f32.vlgmr.msra.gmra.mrb[18].mxu1 %vm445_vm6, %v1556_v10 }
 0xc6c   :  { %3102 = vmatpush3.bf16.msra.mxu1 %v3499_v34  ;;  %2867 = vmatprep.mubr.msk.f32.mxu1 %vm3265_vm0, %v3266_v6 }
 0xc6d   :  { %3103 = vmatprep.subr.bf16.mxu1 %v3264_v3 }
 0xc6f   :  { %2868 = vmatmul.mubr.msk.f32.vlgmr.msra.gmra.mrb[20].mxu1 %vm445_vm6, %v3485_v29 }
 0xc70   :  { %3105 = vmatpush3.bf16.msra.mxu1 %v3530_v49  ;;  %2886 = vmatprep.mubr.msk.f32.mxu1 %vm3265_vm0, %v3266_v6 }
 0xc71   :  { %3106 = vmatprep.subr.bf16.mxu1 %v3264_v3 }
 0xc74   :  { %3108 = vmatpush3.bf16.msra.mxu1 %v3536_v51 }
 0xc75   :  { %3109 = vmatprep.subr.bf16.mxu1 %v3264_v3 }
 0xc78   :  { %3111 = vmatpush3.bf16.msra.mxu1 %v3547_v56 }
 0xc79   :  { %3112 = vmatprep.subr.bf16.mxu1 %v3264_v3 }
 0xc7c   :  { %3114 = vmatpush3.bf16.msra.mxu1 %v3557_v61 }
 0xc7d   :  { %3133 = vmatprep.subr.bf16.mxu1 %v3264_v3 }
 0xd3e   :  { %v1626_v29 = vpop.f32.mrb[18].mxu1 }
 0xd3f   :  { %v1627_v11 = vadd.f32 %v3634_v25, %v1626_v29  ;;  %v2862_v12 = vpop.f32.mrb[19].mxu1 }
 0xd41   :  { %v1631_v13 = vand.u32 2147483647, %v1627_v11  ;;  %v1630_v37 = vmax.f32 %v1627_v11, 0.0 }
 0xd42   :  { %v1716_v16 = vpop.f32.mrb[20].mxu1 }
 0xd43   :  { %v1632_v17 = vsub.f32 0.0, %v1631_v13  ;;  %v1717_v18 = vadd.f32 %v1716_v16, %v3564_v0  ;;  %v2869_v19 = vpop.f32.mrb[21].mxu1 }
 0xd45   :  { %v1633_v20 = vmul.f32 1.442695, %v1632_v17  ;;  %v1720_v21 = vmax.f32 %v1717_v18, 0.0 }
 0xd47   :  { %3196 = vpow2.f32 %v1633_v20  ;;  %2887 = vmatmul.mubr.msk.f32.vlgmr.msra.gmra.mrb[22].mxu1 %vm133_vm2, %v1720_v21 }
 0xd48   :  { %3135 = vmatpush3.bf16.msra.mxu1 %v3576_v8  ;;  %2926 = vmatprep.mubr.msk.f32.mxu1 %vm3265_vm0, %v3266_v6 }
 0xd49   :  { %3136 = vmatprep.subr.bf16.mxu1 %v3264_v3 }
 0xd51   :  { %v3197_v22 = vpop.eup %3196 }
 0xd52   :  { %v1635_v23 = vadd.f32 1.0, %v3197_v22  ;;  %v1638_v24 = vmul.f32 -0.5, %v3197_v22  ;;  %v1641_v27 = vand.u32 2147483647, %v3197_v22 }
 0xd54   :  { %3198 = vlog2.f32 %v1635_v23  ;;  %v1639_v26 = vadd.f32 1.0, %v1638_v24  ;;  %vm1642_vm12 = vcmp.lt.f32.partialorder %v1641_v27, 0.0004427343 }
 0xd55   :  { %3200 = vpow2.f32 %v678_v43 }
 0xd56   :  { %v1640_v36 = vmul.f32 %v3197_v22, %v1639_v26 }
 0xd5e   :  { %v3199_v32 = vpop.eup %3198 }
 0xd5f   :  { %v1637_v33 = vmul.f32 0.6931472, %v3199_v32  ;;  %v3201_v45 = vpop.eup %3200 }
 0xd60   :  { %v680_v46 = vadd.f32 1.0, %v3201_v45  ;;  %v683_v47 = vmul.f32 -0.5, %v3201_v45  ;;  %v686_v53 = vand.u32 2147483647, %v3201_v45 }
 0xd61   :  { %v1643_v38 = vsel %vm1642_vm12, %v1640_v36, %v1637_v33 }
 0xd62   :  { %v1644_v39 = vadd.f32 %v1643_v38, %v1630_v37  ;;  %3202 = vlog2.f32 %v680_v46  ;;  %v684_v50 = vadd.f32 1.0, %v683_v47  ;;  %vm687_vm13 = vcmp.lt.f32.partialorder %v686_v53, 0.0004427343 }
 0xd64   :  { %v1645_v28 = vsel %vm692_vm9, %v1627_v11, %v1644_v39  ;;  %v685_v57 = vmul.f32 %v3201_v45, %v684_v50 }
 0xd65   :  { %2373 = vrot.lane.b32.xlu1 %v1645_v28, %s3269_s20 }
 0xd69   :  { %340 = vrot.lane.b32.xlu1 %v3513_v44, %s3275_s4  ;;  %v675_v44 = vmax.f32 %v672_v40, 0.0 }
 0xd6c   :  { %v3203_v48 = vpop.eup %3202 }
 0xd6d   :  { %v682_v54 = vmul.f32 0.6931472, %v3203_v48 }
 0xd6f   :  { %v688_v58 = vsel %vm687_vm13, %v685_v57, %v682_v54 }
 0xd70   :  { %v689_v60 = vadd.f32 %v688_v58, %v675_v44 }
 0xd72   :  { %v693_v63 = vsel %vm692_vm9, %v672_v40, %v689_v60 }
 0xd73   :  { %v2388_v1 = vsel %vm445_vm6, %v693_v63, %v2362_v59 }
 0xd74   :  { %v2390_v35 = vsel %vm2389_vm14, %v2388_v1, %v2366_v15 }
 0xd75   :  { %v2392_v2 = vsel %vm2391_vm15, %v2390_v35, %v2370_v62 }
 0xdd7   :  { %v2374_v4 = vpop.permute.xlu1 %2373 }
 0xdd8   :  { %v3740_v5 = vsel %vm133_vm2, %v2392_v2, %v2374_v4 }
 0xddb   :  { %v341_v10 = vpop.permute.xlu1 %340 }
 0xddc   :  { %v346_v29 = vsel %vm345_vm1, %v344_v7, %v341_v10 }
 0xddd   :  { %348 = vst.msk [vmem:[#allocation3] sm:$0x3] %vm347_vm3, %v346_v29 }
 0xe1a   :  { %v1790_v11 = vpop.f32.mrb[22].mxu1 }
 0xe1b   :  { %v1791_v12 = vadd.f32 %v3585_v9, %v1790_v11  ;;  %v2888_v13 = vpop.f32.mrb[23].mxu1 }
 0xe1d   :  { %v1794_v16 = vmax.f32 %v1791_v12, 0.0 }
 0xe1f   :  { %2894 = vmatmul.mubr.msk.f32.vlgmr.msra.gmra.mrb[18].mxu0 %vm445_vm6, %v1794_v16 }
 0xe20   :  { %3120 = vmatpush3.bf16.msra.mxu0 %v3499_v34  ;;  %2900 = vmatprep.mubr.msk.f32.mxu0 %vm3265_vm0, %v3266_v6 }
 0xe21   :  { %3121 = vmatprep.subr.bf16.mxu0 %v3264_v3 }
 0xe23   :  { %2901 = vmatmul.mubr.msk.f32.vlgmr.msra.gmra.mrb[20].mxu0 %vm445_vm6, %v3487_v30 }
 0xe24   :  { %3123 = vmatpush3.bf16.msra.mxu0 %v3530_v49  ;;  %2919 = vmatprep.mubr.msk.f32.mxu0 %vm3265_vm0, %v3266_v6 }
 0xe25   :  { %3124 = vmatprep.subr.bf16.mxu0 %v3264_v3 }
 0xe28   :  { %3126 = vmatpush3.bf16.msra.mxu0 %v3536_v51 }
 0xe29   :  { %3127 = vmatprep.subr.bf16.mxu0 %v3264_v3 }
 0xe2c   :  { %3129 = vmatpush3.bf16.msra.mxu0 %v3547_v56 }
 0xe2d   :  { %3130 = vmatprep.subr.bf16.mxu0 %v3264_v3 }
 0xe30   :  { %3132 = vmatpush3.bf16.msra.mxu0 %v3557_v61 }
 0xe31   :  { %3151 = vmatprep.subr.bf16.mxu0 %v3264_v3 }
 0xef2   :  { %v1864_v14 = vpop.f32.mrb[18].mxu0 }
 0xef3   :  { %v1865_v30 = vadd.f32 %v3634_v25, %v1864_v14  ;;  %v2895_v17 = vpop.f32.mrb[19].mxu0 }
 0xef5   :  { %v1869_v18 = vand.u32 2147483647, %v1865_v30  ;;  %v1868_v28 = vmax.f32 %v1865_v30, 0.0 }
 0xef6   :  { %v1954_v19 = vpop.f32.mrb[20].mxu0 }
 0xef7   :  { %v1870_v20 = vsub.f32 0.0, %v1869_v18  ;;  %v1955_v21 = vadd.f32 %v1954_v19, %v3564_v0  ;;  %v2902_v22 = vpop.f32.mrb[21].mxu0 }
 0xef9   :  { %v1871_v23 = vmul.f32 1.442695, %v1870_v20  ;;  %v1958_v24 = vmax.f32 %v1955_v21, 0.0 }
 0xefb   :  { %3204 = vpow2.f32 %v1871_v23  ;;  %2920 = vmatmul.mubr.msk.f32.vlgmr.msra.gmra.mrb[22].mxu0 %vm133_vm2, %v1958_v24 }
 0xefc   :  { %3153 = vmatpush3.bf16.msra.mxu0 %v3576_v8  ;;  %2959 = vmatprep.mubr.msk.f32.mxu0 %vm3265_vm0, %v3266_v6 }
 0xf05   :  { %v3205_v26 = vpop.eup %3204 }
 0xf06   :  { %v1873_v27 = vadd.f32 1.0, %v3205_v26  ;;  %v1876_v32 = vmul.f32 -0.5, %v3205_v26  ;;  %v1879_v36 = vand.u32 2147483647, %v3205_v26 }
 0xf08   :  { %3206 = vlog2.f32 %v1873_v27  ;;  %v1877_v33 = vadd.f32 1.0, %v1876_v32  ;;  %vm1880_vm4 = vcmp.lt.f32.partialorder %v1879_v36, 0.0004427343 }
 0xf0a   :  { %v1878_v39 = vmul.f32 %v3205_v26, %v1877_v33 }
 0xf12   :  { %v3207_v37 = vpop.eup %3206 }
 0xf13   :  { %v1875_v38 = vmul.f32 0.6931472, %v3207_v37 }
 0xf15   :  { %v1881_v40 = vsel %vm1880_vm4, %v1878_v39, %v1875_v38 }
 0xf16   :  { %v1882_v41 = vadd.f32 %v1881_v40, %v1868_v28 }
 0xf18   :  { %v1883_v42 = vsel %vm692_vm9, %v1865_v30, %v1882_v41 }
 0xf19   :  { %2377 = vrot.lane.b32.xlu0 %v1883_v42, %s3273_s2 }
 0xfce   :  { %v2028_v8 = vpop.f32.mrb[22].mxu0 }
 0xfcf   :  { %v2029_v43 = vadd.f32 %v3585_v9, %v2028_v8  ;;  %v2921_v45 = vpop.f32.mrb[23].mxu0 }
 0xfd1   :  { %v2032_v46 = vmax.f32 %v2029_v43, 0.0 }
 0xfd3   :  { %2927 = vmatmul.mubr.msk.f32.vlgmr.msra.gmra.mrb[24].mxu1 %vm445_vm6, %v2032_v46 }
 0xfd4   :  { %3138 = vmatpush3.bf16.msra.mxu1 %v3499_v34  ;;  %2933 = vmatprep.mubr.msk.f32.mxu1 %vm3265_vm0, %v3266_v6 }
 0xfd5   :  { %3139 = vmatprep.subr.bf16.mxu1 %v3264_v3 }
 0xfd7   :  { %2934 = vmatmul.mubr.msk.f32.vlgmr.msra.gmra.mrb[26].mxu1 %vm445_vm6, %v3489_v31 }
 0xfd8   :  { %3141 = vmatpush3.bf16.msra.mxu1 %v3530_v49  ;;  %2952 = vmatprep.mubr.msk.f32.mxu1 %vm3265_vm0, %v3266_v6 }
 0xfd9   :  { %3142 = vmatprep.subr.bf16.mxu1 %v3264_v3 }
 0xfdc   :  { %3144 = vmatpush3.bf16.msra.mxu1 %v3536_v51 }
 0xfdd   :  { %3145 = vmatprep.subr.bf16.mxu1 %v3264_v3 }
 0xfe0   :  { %3147 = vmatpush3.bf16.msra.mxu1 %v3547_v56 }
 0xfe1   :  { %3148 = vmatprep.subr.bf16.mxu1 %v3264_v3 }
 0xfe4   :  { %3150 = vmatpush3.bf16.msra.mxu1 %v3557_v61 }
0x10a6   :  { %v2102_v34 = vpop.f32.mrb[24].mxu1 }
0x10a7   :  { %v2103_v31 = vadd.f32 %v3634_v25, %v2102_v34  ;;  %v2928_v47 = vpop.f32.mrb[25].mxu1 }
0x10a9   :  { %v2107_v49 = vand.u32 2147483647, %v2103_v31  ;;  %v2106_v60 = vmax.f32 %v2103_v31, 0.0 }
0x10aa   :  { %v2192_v48 = vpop.f32.mrb[26].mxu1 }
0x10ab   :  { %v2108_v50 = vsub.f32 0.0, %v2107_v49  ;;  %v2193_v6 = vadd.f32 %v2192_v48, %v3564_v0  ;;  %v2935_v53 = vpop.f32.mrb[27].mxu1 }
0x10ad   :  { %v2109_v54 = vmul.f32 1.442695, %v2108_v50  ;;  %v2196_v51 = vmax.f32 %v2193_v6, 0.0 }
0x10af   :  { %3208 = vpow2.f32 %v2109_v54  ;;  %2953 = vmatmul.mubr.msk.f32.vlgmr.msra.gmra.mrb[28].mxu1 %vm133_vm2, %v2196_v51 }
0x10b9   :  { %v3209_v56 = vpop.eup %3208 }
0x10ba   :  { %v2111_v55 = vadd.f32 1.0, %v3209_v56  ;;  %v2114_v3 = vmul.f32 -0.5, %v3209_v56  ;;  %v2117_v57 = vand.u32 2147483647, %v3209_v56 }
0x10bc   :  { %3210 = vlog2.f32 %v2111_v55  ;;  %v2115_v61 = vadd.f32 1.0, %v2114_v3  ;;  %vm2118_vm0 = vcmp.lt.f32.partialorder %v2117_v57, 0.0004427343 }
0x10be   :  { %v2116_v59 = vmul.f32 %v3209_v56, %v2115_v61 }
0x10c6   :  { %v3211_v58 = vpop.eup %3210 }
0x10c7   :  { %v2113_v44 = vmul.f32 0.6931472, %v3211_v58 }
0x10c9   :  { %v2119_v15 = vsel %vm2118_vm0, %v2116_v59, %v2113_v44 }
0x10ca   :  { %v2120_v62 = vadd.f32 %v2119_v15, %v2106_v60 }
0x10cc   :  { %v2121_v0 = vsel %vm692_vm9, %v2103_v31, %v2120_v62 }
0x10cd   :  { %2381 = vrot.lane.b32.xlu0 %v2121_v0, %s3268_s19  ;;  %s3276_s19 = smov [#allocation3]  }
0x10ce   :  { %s2407_s20 = sshll.u32 %s3276_s19, 4  ;;  %s2408_s20 = int_to_ptr.vmem [resolvable:$true] %s2407_s20 }
0x10cf   :  { %s3216_s21 = scalar_lea.vmem %s2408_s20, 32  ;;  %p3221_p1 = scmp.lt.s32.totalorder %s2408_s20, %s2408_s20 }
0x10d0   :  { %p3217_p0 = scmp.ne.s32.totalorder %s2408_s20, %s3216_s21  ;;  %p3222_p2 = scmp.lt.s32.totalorder %s3216_s21, %s3216_s21 }
0x10d2   :  { %p3223_p3 = por %p3222_p2, %p3221_p1 }
0x10d4   :  { %p3224_p4 = pnand %p3223_p3, %p3217_p0 }
0x1182   :  { %v2266_v63 = vpop.f32.mrb[28].mxu1 }
0x1183   :  { %v2267_v1 = vadd.f32 %v3585_v9, %v2266_v63  ;;  %v2954_v35 = vpop.f32.mrb[29].mxu1 }
0x1185   :  { %v2270_v2 = vmax.f32 %v2267_v1, 0.0 }
0x1187   :  { %2960 = vmatmul.mubr.msk.f32.vlgmr.msra.gmra.mrb[24].mxu0 %vm445_vm6, %v2270_v2 }
0x125a   :  { %v2340_v4 = vpop.f32.mrb[24].mxu0 }
0x125b   :  { %v2341_v7 = vadd.f32 %v3634_v25, %v2340_v4  ;;  %v2961_v10 = vpop.f32.mrb[25].mxu0 }
0x125d   :  { %v2345_v29 = vand.u32 2147483647, %v2341_v7 }
0x125f   :  { %v2346_v11 = vsub.f32 0.0, %v2345_v29 }
0x1261   :  { %v2347_v12 = vmul.f32 1.442695, %v2346_v11 }
0x1263   :  { %3212 = vpow2.f32 %v2347_v12 }
0x126d   :  { %v3213_v13 = vpop.eup %3212 }
0x126e   :  { %v2349_v16 = vadd.f32 1.0, %v3213_v13  ;;  %v2352_v14 = vmul.f32 -0.5, %v3213_v13 }
0x1270   :  { %3214 = vlog2.f32 %v2349_v16 }
0x1271   :  { %3227 = shalt.err (!%p3224_p4)
}
0x1272   :  { %s3228_s2 = scalar_lea.hbm %s3830_s5, 32 }
0x1273   :  { %p3229_p5 = scmp.ne.s32.totalorder %s3830_s5, %s3228_s2  ;;  %p3232_p6 = scmp.lt.u32.totalorder %s3228_s2, %s3830_s5 }
0x1275   :  { %p3234_p7 = pnand %p3232_p6, %p3229_p5 }
0x1277   :  { %3237 = shalt.err (!%p3234_p7)
}
0x1278   :  { %2410 = dma.vmem_to_hbm [thread:$0]  %s2408_s20, 32, %s3830_s5, [#allocation4]   ;;  %v2353_v9 = vadd.f32 1.0, %v2352_v14  ;;  %v2355_v25 = vand.u32 2147483647, %v3213_v13  ;;  %v2344_v19 = vmax.f32 %v2341_v7, 0.0  ;;  %v2378_v23 = vpop.permute.xlu0 %2377 }
0x1279   :  { %vm2394_vm5 = vcmask 654336   ;;  %vm2396_vm6 = vcmask 785408   ;;  %s3277_s27 = smov [#allocation5]   ;;  %vm2398_vm7 = vcmask 916480  }
0x127a   :  { %v3215_v30 = vpop.eup %3214  ;;  %v2354_v18 = vmul.f32 %v3213_v13, %v2353_v9  ;;  %vm2356_vm2 = vcmp.lt.f32.partialorder %v2355_v25, 0.0004427343  ;;  %s2417_s5 = sshll.u32 %s3277_s27, 4  ;;  %v2395_v26 = vsel %vm2394_vm5, %v3740_v5, %v2378_v23  ;;  %s2418_s5 = int_to_ptr.vmem [resolvable:$true] %s2417_s5 }
0x127b   :  { %v2351_v17 = vmul.f32 0.6931472, %v3215_v30  ;;  %s3238_s28 = scalar_lea.vmem %s2418_s5, 32  ;;  %p3243_p9 = scmp.lt.s32.totalorder %s2418_s5, %s2418_s5 }
0x127c   :  { %v2382_v24 = vpop.permute.xlu0 %2381  ;;  %p3239_p8 = scmp.ne.s32.totalorder %s2418_s5, %s3238_s28  ;;  %p3244_p10 = scmp.lt.s32.totalorder %s3238_s28, %s3238_s28 }
0x127d   :  { %v2357_v20 = vsel %vm2356_vm2, %v2354_v18, %v2351_v17  ;;  %v2397_v27 = vsel %vm2396_vm6, %v2395_v26, %v2382_v24 }
0x127e   :  { %v2358_v21 = vadd.f32 %v2357_v20, %v2344_v19  ;;  %p3245_p11 = por %p3244_p10, %p3243_p9 }
0x1280   :  { %v2359_v22 = vsel %vm692_vm9, %v2341_v7, %v2358_v21  ;;  %p3246_p12 = pnand %p3245_p11, %p3239_p8 }
0x1281   :  { %2385 = vrot.lane.b32.xlu0 %v2359_v22, %s3267_s18 }
0x12f3   :  { %v2386_v32 = vpop.permute.xlu0 %2385 }
0x12f4   :  { %v2399_v33 = vsel %vm2398_vm7, %v2397_v27, %v2386_v32 }
0x12f5   :  { %2400 = vst [vmem:[#allocation5] sm:$0x3] %v2399_v33 }
0x12f6   :  { %3249 = shalt.err (!%p3246_p12)
}
0x12f7   :  { %s3250_s30 = scalar_lea.hbm %s3831_s6, 32 }
0x12f8   :  { %p3251_p13 = scmp.ne.s32.totalorder %s3831_s6, %s3250_s30  ;;  %p3254_p0 = scmp.lt.u32.totalorder %s3250_s30, %s3831_s6 }
0x12fa   :  { %p3256_p1 = pnand %p3254_p0, %p3251_p13 }
0x12fc   :  { %3259 = shalt.err (!%p3256_p1)
}
0x12fd   :  { %2420 = dma.vmem_to_hbm [thread:$0]  %s2418_s5, 32, %s3831_s6, [#allocation6]  }
0x12fe   :  { %3260 = dma.done.wait [#allocation4], 32  }
0x12ff   :  { %3261 = vsyncadd [#allocation4], 4294967264 }
0x1300   :  { %3262 = dma.done.wait [#allocation6], 32  }
0x1301   :  { %3263 = vsyncadd [#allocation6], 4294967264 }
0x1302   :  { %2427 = vsyncpa [#allocation4], 1 }
0x1303   :  { %2428 = vsyncpa [#allocation6], 1 }

</bundles_post_ra>
